<compile_context>
chip_gen: v6e
topology: v6e:2x2x1
jax: 0.10.0
libtpu: 0.0.40
codegen_flags: <defaults>
</compile_context>

<pallas_src>
import jax
import jax.numpy as jnp
from jax.experimental import pallas as pl
from jax.experimental.pallas import tpu as pltpu


# ----------------------------------------------------------------------------
# Fused bidirectional-LSTM + Linear + LeakyReLU layer kernel
# ----------------------------------------------------------------------------
def _bilstm_layer_kernel(x_ref, a0_ref, c0_ref,
                         wx4_ref, wa4_ref, b4_ref,
                         wtop_ref, wbot_ref, lb_ref,
                         o_ref,
                         ar_sc, al_sc):
    TB = x_ref.shape[0]
    B, H = a0_ref.shape
    T = TB // B

    # (1) hoisted input projection for ALL timesteps: one big matmul, outside
    #     the serial dependence chain.
    xp = (jnp.dot(x_ref[...], wx4_ref[...], preferred_element_type=jnp.float32)
          + b4_ref[...])                       # (T*B, 4H)

    wa4 = wa4_ref[...]                          # (H, 4H), loaded once

    # lane mask: lanes [0, H) are the candidate gate (tanh), the remaining
    # lanes are the update/forget/output gates (sigmoid).  Since
    # sigmoid(z) = 0.5*tanh(0.5*z) + 0.5, one full-width EUP tanh per step
    # covers all four gates (128-lane-occupied vregs, no narrow sub-tiles).
    lane = jax.lax.broadcasted_iota(jnp.int32, (B, 4 * H), 1)
    is_cand = lane < H

    def lstm_step(zx, a, c):
        z = zx + jnp.dot(a, wa4, preferred_element_type=jnp.float32)   # (B, 4H)
        th = jnp.tanh(jnp.where(is_cand, z, 0.5 * z))
        g = jnp.where(is_cand, th, 0.5 * th + 0.5)
        cand = g[:, 0:H]
        g_u = g[:, H:2 * H]
        g_f = g[:, 2 * H:3 * H]
        g_o = g[:, 3 * H:4 * H]
        c1 = g_u * cand + g_f * c
        a1 = g_o * jnp.tanh(c1)
        return a1, c1

    # (2) forward direction.  T is static -> fully unrolled serial chain
    #     (maximum LLO scheduling visibility, no loop overhead).
    a = a0_ref[...]
    c = c0_ref[...]
    for t in range(T):
        a, c = lstm_step(xp[t * B:(t + 1) * B, :], a, c)
        ar_sc[pl.ds(t * B, B), :] = a

    # (3) backward direction, seeded with the forward finals.  Reads the
    #     reversed pre-activations in place; outputs stored in *backward* step
    #     order (NOT re-flipped), exactly matching the PyTorch module.
    for t in range(T):
        a, c = lstm_step(xp[(T - 1 - t) * B:(T - t) * B, :], a, c)
        al_sc[pl.ds(t * B, B), :] = a

    # (4) Linear(2H->H) + LeakyReLU over all timesteps at once; the concat of
    #     [aright, aleft] is folded into two matmuls.
    v = (jnp.dot(ar_sc[...], wtop_ref[...], preferred_element_type=jnp.float32)
         + jnp.dot(al_sc[...], wbot_ref[...], preferred_element_type=jnp.float32)
         + lb_ref[...])
    o_ref[...] = jnp.where(v >= 0, v, 0.01 * v)      # LeakyReLU(0.01)


def bilstm_layer_pallas(x_flat, a0, c0, p):
    """x_flat: (T*B, E_in) flat time-major.  Returns (T*B, H)."""
    TB, Ein = x_flat.shape
    B, H = a0.shape

    def full(shape):
        return pl.BlockSpec(shape, lambda i: (0,) * len(shape))

    grid_spec = pltpu.PrefetchScalarGridSpec(
        num_scalar_prefetch=0,
        grid=(1,),
        in_specs=[
            full((TB, Ein)),                 # x (flat time-major)
            full((B, H)), full((B, H)),      # a0, c0
            full((Ein, 4 * H)),              # Wx for all 4 gates [c|u|f|o]
            full((H, 4 * H)),                # Wa for all 4 gates
            full((1, 4 * H)),                # fused biases
            full((H, H)), full((H, H)),      # linear weight (aright | aleft halves)
            full((1, H)),                    # linear bias
        ],
        out_specs=full((TB, H)),
        scratch_shapes=[pltpu.VMEM((TB, H), jnp.float32),   # aright
                        pltpu.VMEM((TB, H), jnp.float32)],  # aleft
    )
    return pl.pallas_call(
        _bilstm_layer_kernel,
        out_shape=jax.ShapeDtypeStruct((TB, H), jnp.float32),
        grid_spec=grid_spec,
        compiler_params=pltpu.CompilerParams(dimension_semantics=("arbitrary",)),
    )(x_flat, a0, c0,
      p['wx4'], p['wa4'], p['b4'],
      p['wtop'], p['wbot'], p['lin_b'])


# ----------------------------------------------------------------------------
# Depth_LSTM forward (glue in plain JAX, hot path in one kernel per layer)
# ----------------------------------------------------------------------------
def depth_lstm_forward(x_ids, a0, c0, embed_table, layers):
    # TODO(synk): embedding gather kept as plain-JAX jnp.take (data-dependent
    # gather; not the hot path at these sizes).
    B, T = x_ids.shape
    x = jnp.take(embed_table, x_ids, axis=0)              # (B, T, E)
    x = jnp.transpose(x, (1, 0, 2)).reshape(T * B, -1)    # flat time-major
    for layer in layers:
        x = bilstm_layer_pallas(x, a0, c0, layer)         # (T*B, H)
    H = x.shape[-1]
    return jnp.transpose(x.reshape(T, B, H), (1, 0, 2))   # back to (B, T, H)


# ----------------------------------------------------------------------------
# Pure-JAX reference (mirrors the PyTorch forward literally)
# ----------------------------------------------------------------------------
def _sigmoid(z):
    return 1.0 / (1.0 + jnp.exp(-z))


def _lstm_single_ref(x_bte, a0, c0, p):
    T = x_bte.shape[1]
    a, c = a0, c0
    outs = []
    for t in range(T):
        xa = jnp.concatenate([a, x_bte[:, t, :]], axis=1)
        cand = jnp.tanh(xa @ p['w_c'].T + p['b_c'])
        g_u = _sigmoid(xa @ p['w_u'].T + p['b_u'])
        g_f = _sigmoid(xa @ p['w_f'].T + p['b_f'])
        g_o = _sigmoid(xa @ p['w_o'].T + p['b_o'])
        c = g_u * cand + g_f * c
        a = g_o * jnp.tanh(c)
        outs.append(a)
    return jnp.stack(outs, axis=1), a, c


def depth_lstm_ref(x_ids, a0, c0, embed_table, layers_ref):
    x = jnp.take(embed_table, x_ids, axis=0)
    for p in layers_ref:
        aright, a_r, c_r = _lstm_single_ref(x, a0, c0, p)
        aleft, _, _ = _lstm_single_ref(x[:, ::-1, :], a_r, c_r, p)
        xcat = jnp.concatenate([aright, aleft], axis=2)
        v = xcat @ p['lin_w'].T + p['lin_b']
        x = jnp.where(v >= 0, v, 0.01 * v)
    return x


# ----------------------------------------------------------------------------
# Deterministic parameter init (shapes follow the PyTorch __init__)
# ----------------------------------------------------------------------------
def _xavier_uniform(key, shape):
    fan_out, fan_in = shape
    bound = (6.0 / (fan_in + fan_out)) ** 0.5
    return jax.random.uniform(key, shape, jnp.float32, -bound, bound)


def init_params(key, depth, E, H, V):
    k_embed, k_rest = jax.random.split(key)
    embed = jax.random.normal(k_embed, (V, E), jnp.float32)  # nn.Embedding ~ N(0,1)
    keys = jax.random.split(k_rest, depth * 10)
    layers, layers_ref = [], []
    ki = 0
    for d in range(depth):
        in_d = E if d == 0 else H
        ref = {}
        wa_parts, wx_parts, b_parts = [], [], []
        for g in ('c', 'u', 'f', 'o'):
            w = _xavier_uniform(keys[ki], (H, H + in_d)); ki += 1
            b = _xavier_uniform(keys[ki], (1, H)); ki += 1
            ref['w_' + g] = w
            ref['b_' + g] = b
            wa_parts.append(jnp.transpose(w[:, :H]))    # (H, H)
            wx_parts.append(jnp.transpose(w[:, H:]))    # (in_d, H)
            b_parts.append(b)
        lin_w = _xavier_uniform(keys[ki], (H, 2 * H)); ki += 1
        lin_b = jax.random.uniform(keys[ki], (1, H), jnp.float32,
                                   -1.0 / (2 * H) ** 0.5, 1.0 / (2 * H) ** 0.5); ki += 1
        ref['lin_w'] = lin_w
        ref['lin_b'] = lin_b
        layers.append({
            'wx4': jnp.concatenate(wx_parts, axis=1),   # (in_d, 4H)
            'wa4': jnp.concatenate(wa_parts, axis=1),   # (H, 4H)
            'b4': jnp.concatenate(b_parts, axis=1),     # (1, 4H)
            'wtop': jnp.transpose(lin_w[:, :H]),        # (H, H)  (aright half)
            'wbot': jnp.transpose(lin_w[:, H:]),        # (H, H)  (aleft half)
            'lin_b': lin_b,
        })
        layers_ref.append(ref)
    return embed, layers, layers_ref


# ----------------------------------------------------------------------------
if __name__ == "__main__":
    B, T, E, H, V, depth = 8, 8, 32, 32, 100, 2

    key = jax.random.PRNGKey(0)
    k_param, k_ids, k_a, k_c = jax.random.split(key, 4)

    embed, layers, layers_ref = init_params(k_param, depth, E, H, V)
    x_ids = jax.random.randint(k_ids, (B, T), 0, V)         # token ids
    a0 = jax.random.normal(k_a, (B, H), jnp.float32)         # initial hidden
    c0 = jax.random.normal(k_c, (B, H), jnp.float32)         # initial cell

    fwd = jax.jit(depth_lstm_forward)
    out = fwd(x_ids, a0, c0, embed, layers)
    out = jax.block_until_ready(out)

    ref = depth_lstm_ref(x_ids, a0, c0, embed, layers_ref)
    assert out.shape == (B, T, H), out.shape
    err = float(jnp.max(jnp.abs(out - ref)))
    assert jnp.allclose(out, ref, atol=1e-4, rtol=1e-4), f"max abs err {err}"

    print("KERNEL_OK")
</pallas_src>

<mosaic_0001>
module attributes {stable_mosaic.version = 11 : i64} {
  func.func @_bilstm_layer_kernel(%arg0: i32, %arg1: memref<64x32xf32, #tpu.memory_space<vmem>>, %arg2: memref<8x32xf32, #tpu.memory_space<vmem>>, %arg3: memref<8x32xf32, #tpu.memory_space<vmem>>, %arg4: memref<32x128xf32, #tpu.memory_space<vmem>>, %arg5: memref<32x128xf32, #tpu.memory_space<vmem>>, %arg6: memref<1x128xf32, #tpu.memory_space<vmem>>, %arg7: memref<32x32xf32, #tpu.memory_space<vmem>>, %arg8: memref<32x32xf32, #tpu.memory_space<vmem>>, %arg9: memref<1x32xf32, #tpu.memory_space<vmem>>, %arg10: memref<64x32xf32, #tpu.memory_space<vmem>>, %arg11: memref<64x32xf32, #tpu.memory_space<vmem>>, %arg12: memref<64x32xf32, #tpu.memory_space<vmem>>) attributes {dimension_semantics = [#tpu.dimension_semantics<arbitrary>], iteration_bounds = array<i64: 1>, scalar_prefetch = 0 : i64, scratch_operands = 2 : i64, tpu.core_type = #tpu.core_type<tc>, window_params = [{pipeline_mode = #tpu.pipeline_mode<synchronous>, transform_indices = @transform_0, window_bounds = array<i64: 64, 32>}, {pipeline_mode = #tpu.pipeline_mode<synchronous>, transform_indices = @transform_1, window_bounds = array<i64: 8, 32>}, {pipeline_mode = #tpu.pipeline_mode<synchronous>, transform_indices = @transform_2, window_bounds = array<i64: 8, 32>}, {pipeline_mode = #tpu.pipeline_mode<synchronous>, transform_indices = @transform_3, window_bounds = array<i64: 32, 128>}, {pipeline_mode = #tpu.pipeline_mode<synchronous>, transform_indices = @transform_4, window_bounds = array<i64: 32, 128>}, {pipeline_mode = #tpu.pipeline_mode<synchronous>, transform_indices = @transform_5, window_bounds = array<i64: 1, 128>}, {pipeline_mode = #tpu.pipeline_mode<synchronous>, transform_indices = @transform_6, window_bounds = array<i64: 32, 32>}, {pipeline_mode = #tpu.pipeline_mode<synchronous>, transform_indices = @transform_7, window_bounds = array<i64: 32, 32>}, {pipeline_mode = #tpu.pipeline_mode<synchronous>, transform_indices = @transform_8, window_bounds = array<i64: 1, 32>}, {pipeline_mode = #tpu.pipeline_mode<synchronous>, transform_indices = @transform_9, window_bounds = array<i64: 64, 32>}]} {
    %c0 = arith.constant 0 : index
    %c0_0 = arith.constant 0 : index
    %0 = vector.load %arg1[%c0, %c0_0] : memref<64x32xf32, #tpu.memory_space<vmem>>, vector<64x32xf32>
    %c0_1 = arith.constant 0 : index
    %c0_2 = arith.constant 0 : index
    %1 = vector.load %arg4[%c0_1, %c0_2] : memref<32x128xf32, #tpu.memory_space<vmem>>, vector<32x128xf32>
    %cst = arith.constant dense<0.000000e+00> : vector<64x128xf32>
    %2 = tpu.matmul %0, %1, %cst {dimension_numbers = #tpu.dot_dimension_numbers<[1], [0], [0], [1], [0, 0, 1, 1], [], []>} : vector<64x32xf32>, vector<32x128xf32>, vector<64x128xf32> -> vector<64x128xf32>
    %c0_3 = arith.constant 0 : index
    %c0_4 = arith.constant 0 : index
    %3 = vector.load %arg6[%c0_3, %c0_4] : memref<1x128xf32, #tpu.memory_space<vmem>>, vector<1x128xf32>
    %4 = vector.broadcast %3 : vector<1x128xf32> to vector<64x128xf32>
    %5 = arith.addf %2, %4 : vector<64x128xf32>
    %c0_5 = arith.constant 0 : index
    %c0_6 = arith.constant 0 : index
    %6 = vector.load %arg5[%c0_5, %c0_6] : memref<32x128xf32, #tpu.memory_space<vmem>>, vector<32x128xf32>
    %7 = tpu.iota {dimensions = array<i32: 1>} : vector<8x128xi32>
    %c32_i32 = arith.constant 32 : i32
    %8 = vector.broadcast %c32_i32 : i32 to vector<8x128xi32>
    %9 = arith.cmpi slt, %7, %8 : vector<8x128xi32>
    %c0_7 = arith.constant 0 : index
    %c0_8 = arith.constant 0 : index
    %10 = vector.load %arg2[%c0_7, %c0_8] : memref<8x32xf32, #tpu.memory_space<vmem>>, vector<8x32xf32>
    %c0_9 = arith.constant 0 : index
    %c0_10 = arith.constant 0 : index
    %11 = vector.load %arg3[%c0_9, %c0_10] : memref<8x32xf32, #tpu.memory_space<vmem>>, vector<8x32xf32>
    %12 = vector.extract_strided_slice %5 {offsets = [0, 0], sizes = [8, 128], strides = [1, 1]} : vector<64x128xf32> to vector<8x128xf32>
    %cst_11 = arith.constant dense<0.000000e+00> : vector<8x128xf32>
    %13 = tpu.matmul %10, %6, %cst_11 {dimension_numbers = #tpu.dot_dimension_numbers<[1], [0], [0], [1], [0, 0, 1, 1], [], []>} : vector<8x32xf32>, vector<32x128xf32>, vector<8x128xf32> -> vector<8x128xf32>
    %14 = arith.addf %12, %13 : vector<8x128xf32>
    %cst_12 = arith.constant 5.000000e-01 : f32
    %15 = vector.broadcast %cst_12 : f32 to vector<8x128xf32>
    %16 = arith.mulf %15, %14 : vector<8x128xf32>
    %17 = arith.select %9, %14, %16 : vector<8x128xi1>, vector<8x128xf32>
    %18 = math.tanh %17 : vector<8x128xf32>
    %cst_13 = arith.constant 5.000000e-01 : f32
    %19 = vector.broadcast %cst_13 : f32 to vector<8x128xf32>
    %20 = arith.mulf %19, %18 : vector<8x128xf32>
    %cst_14 = arith.constant 5.000000e-01 : f32
    %21 = vector.broadcast %cst_14 : f32 to vector<8x128xf32>
    %22 = arith.addf %20, %21 : vector<8x128xf32>
    %23 = arith.select %9, %18, %22 : vector<8x128xi1>, vector<8x128xf32>
    %24 = vector.extract_strided_slice %23 {offsets = [0, 0], sizes = [8, 32], strides = [1, 1]} : vector<8x128xf32> to vector<8x32xf32>
    %25 = vector.extract_strided_slice %23 {offsets = [0, 32], sizes = [8, 32], strides = [1, 1]} : vector<8x128xf32> to vector<8x32xf32>
    %26 = vector.extract_strided_slice %23 {offsets = [0, 64], sizes = [8, 32], strides = [1, 1]} : vector<8x128xf32> to vector<8x32xf32>
    %27 = vector.extract_strided_slice %23 {offsets = [0, 96], sizes = [8, 32], strides = [1, 1]} : vector<8x128xf32> to vector<8x32xf32>
    %28 = arith.mulf %25, %24 : vector<8x32xf32>
    %29 = arith.mulf %26, %11 : vector<8x32xf32>
    %30 = arith.addf %28, %29 : vector<8x32xf32>
    %31 = math.tanh %30 : vector<8x32xf32>
    %32 = arith.mulf %27, %31 : vector<8x32xf32>
    %c0_15 = arith.constant 0 : index
    %c0_16 = arith.constant 0 : index
    %33 = vector.load %arg11[%c0_15, %c0_16] : memref<64x32xf32, #tpu.memory_space<vmem>>, vector<8x32xf32>
    tpu.vector_store %arg11[%c0_15, %c0_16], %32 {strides = array<i32>} : memref<64x32xf32, #tpu.memory_space<vmem>>, vector<8x32xf32>,
    %34 = vector.extract_strided_slice %5 {offsets = [8, 0], sizes = [8, 128], strides = [1, 1]} : vector<64x128xf32> to vector<8x128xf32>
    %cst_17 = arith.constant dense<0.000000e+00> : vector<8x128xf32>
    %35 = tpu.matmul %32, %6, %cst_17 {dimension_numbers = #tpu.dot_dimension_numbers<[1], [0], [0], [1], [0, 0, 1, 1], [], []>} : vector<8x32xf32>, vector<32x128xf32>, vector<8x128xf32> -> vector<8x128xf32>
    %36 = arith.addf %34, %35 : vector<8x128xf32>
    %cst_18 = arith.constant 5.000000e-01 : f32
    %37 = vector.broadcast %cst_18 : f32 to vector<8x128xf32>
    %38 = arith.mulf %37, %36 : vector<8x128xf32>
    %39 = arith.select %9, %36, %38 : vector<8x128xi1>, vector<8x128xf32>
    %40 = math.tanh %39 : vector<8x128xf32>
    %cst_19 = arith.constant 5.000000e-01 : f32
    %41 = vector.broadcast %cst_19 : f32 to vector<8x128xf32>
    %42 = arith.mulf %41, %40 : vector<8x128xf32>
    %cst_20 = arith.constant 5.000000e-01 : f32
    %43 = vector.broadcast %cst_20 : f32 to vector<8x128xf32>
    %44 = arith.addf %42, %43 : vector<8x128xf32>
    %45 = arith.select %9, %40, %44 : vector<8x128xi1>, vector<8x128xf32>
    %46 = vector.extract_strided_slice %45 {offsets = [0, 0], sizes = [8, 32], strides = [1, 1]} : vector<8x128xf32> to vector<8x32xf32>
    %47 = vector.extract_strided_slice %45 {offsets = [0, 32], sizes = [8, 32], strides = [1, 1]} : vector<8x128xf32> to vector<8x32xf32>
    %48 = vector.extract_strided_slice %45 {offsets = [0, 64], sizes = [8, 32], strides = [1, 1]} : vector<8x128xf32> to vector<8x32xf32>
    %49 = vector.extract_strided_slice %45 {offsets = [0, 96], sizes = [8, 32], strides = [1, 1]} : vector<8x128xf32> to vector<8x32xf32>
    %50 = arith.mulf %47, %46 : vector<8x32xf32>
    %51 = arith.mulf %48, %30 : vector<8x32xf32>
    %52 = arith.addf %50, %51 : vector<8x32xf32>
    %53 = math.tanh %52 : vector<8x32xf32>
    %54 = arith.mulf %49, %53 : vector<8x32xf32>
    %c8 = arith.constant 8 : index
    %c0_21 = arith.constant 0 : index
    %55 = vector.load %arg11[%c8, %c0_21] : memref<64x32xf32, #tpu.memory_space<vmem>>, vector<8x32xf32>
    tpu.vector_store %arg11[%c8, %c0_21], %54 {strides = array<i32>} : memref<64x32xf32, #tpu.memory_space<vmem>>, vector<8x32xf32>,
    %56 = vector.extract_strided_slice %5 {offsets = [16, 0], sizes = [8, 128], strides = [1, 1]} : vector<64x128xf32> to vector<8x128xf32>
    %cst_22 = arith.constant dense<0.000000e+00> : vector<8x128xf32>
    %57 = tpu.matmul %54, %6, %cst_22 {dimension_numbers = #tpu.dot_dimension_numbers<[1], [0], [0], [1], [0, 0, 1, 1], [], []>} : vector<8x32xf32>, vector<32x128xf32>, vector<8x128xf32> -> vector<8x128xf32>
    %58 = arith.addf %56, %57 : vector<8x128xf32>
    %cst_23 = arith.constant 5.000000e-01 : f32
    %59 = vector.broadcast %cst_23 : f32 to vector<8x128xf32>
    %60 = arith.mulf %59, %58 : vector<8x128xf32>
    %61 = arith.select %9, %58, %60 : vector<8x128xi1>, vector<8x128xf32>
    %62 = math.tanh %61 : vector<8x128xf32>
    %cst_24 = arith.constant 5.000000e-01 : f32
    %63 = vector.broadcast %cst_24 : f32 to vector<8x128xf32>
    %64 = arith.mulf %63, %62 : vector<8x128xf32>
    %cst_25 = arith.constant 5.000000e-01 : f32
    %65 = vector.broadcast %cst_25 : f32 to vector<8x128xf32>
    %66 = arith.addf %64, %65 : vector<8x128xf32>
    %67 = arith.select %9, %62, %66 : vector<8x128xi1>, vector<8x128xf32>
    %68 = vector.extract_strided_slice %67 {offsets = [0, 0], sizes = [8, 32], strides = [1, 1]} : vector<8x128xf32> to vector<8x32xf32>
    %69 = vector.extract_strided_slice %67 {offsets = [0, 32], sizes = [8, 32], strides = [1, 1]} : vector<8x128xf32> to vector<8x32xf32>
    %70 = vector.extract_strided_slice %67 {offsets = [0, 64], sizes = [8, 32], strides = [1, 1]} : vector<8x128xf32> to vector<8x32xf32>
    %71 = vector.extract_strided_slice %67 {offsets = [0, 96], sizes = [8, 32], strides = [1, 1]} : vector<8x128xf32> to vector<8x32xf32>
    %72 = arith.mulf %69, %68 : vector<8x32xf32>
    %73 = arith.mulf %70, %52 : vector<8x32xf32>
    %74 = arith.addf %72, %73 : vector<8x32xf32>
    %75 = math.tanh %74 : vector<8x32xf32>
    %76 = arith.mulf %71, %75 : vector<8x32xf32>
    %c16 = arith.constant 16 : index
    %c0_26 = arith.constant 0 : index
    %77 = vector.load %arg11[%c16, %c0_26] : memref<64x32xf32, #tpu.memory_space<vmem>>, vector<8x32xf32>
    tpu.vector_store %arg11[%c16, %c0_26], %76 {strides = array<i32>} : memref<64x32xf32, #tpu.memory_space<vmem>>, vector<8x32xf32>,
    %78 = vector.extract_strided_slice %5 {offsets = [24, 0], sizes = [8, 128], strides = [1, 1]} : vector<64x128xf32> to vector<8x128xf32>
    %cst_27 = arith.constant dense<0.000000e+00> : vector<8x128xf32>
    %79 = tpu.matmul %76, %6, %cst_27 {dimension_numbers = #tpu.dot_dimension_numbers<[1], [0], [0], [1], [0, 0, 1, 1], [], []>} : vector<8x32xf32>, vector<32x128xf32>, vector<8x128xf32> -> vector<8x128xf32>
    %80 = arith.addf %78, %79 : vector<8x128xf32>
    %cst_28 = arith.constant 5.000000e-01 : f32
    %81 = vector.broadcast %cst_28 : f32 to vector<8x128xf32>
    %82 = arith.mulf %81, %80 : vector<8x128xf32>
    %83 = arith.select %9, %80, %82 : vector<8x128xi1>, vector<8x128xf32>
    %84 = math.tanh %83 : vector<8x128xf32>
    %cst_29 = arith.constant 5.000000e-01 : f32
    %85 = vector.broadcast %cst_29 : f32 to vector<8x128xf32>
    %86 = arith.mulf %85, %84 : vector<8x128xf32>
    %cst_30 = arith.constant 5.000000e-01 : f32
    %87 = vector.broadcast %cst_30 : f32 to vector<8x128xf32>
    %88 = arith.addf %86, %87 : vector<8x128xf32>
    %89 = arith.select %9, %84, %88 : vector<8x128xi1>, vector<8x128xf32>
    %90 = vector.extract_strided_slice %89 {offsets = [0, 0], sizes = [8, 32], strides = [1, 1]} : vector<8x128xf32> to vector<8x32xf32>
    %91 = vector.extract_strided_slice %89 {offsets = [0, 32], sizes = [8, 32], strides = [1, 1]} : vector<8x128xf32> to vector<8x32xf32>
    %92 = vector.extract_strided_slice %89 {offsets = [0, 64], sizes = [8, 32], strides = [1, 1]} : vector<8x128xf32> to vector<8x32xf32>
    %93 = vector.extract_strided_slice %89 {offsets = [0, 96], sizes = [8, 32], strides = [1, 1]} : vector<8x128xf32> to vector<8x32xf32>
    %94 = arith.mulf %91, %90 : vector<8x32xf32>
    %95 = arith.mulf %92, %74 : vector<8x32xf32>
    %96 = arith.addf %94, %95 : vector<8x32xf32>
    %97 = math.tanh %96 : vector<8x32xf32>
    %98 = arith.mulf %93, %97 : vector<8x32xf32>
    %c24 = arith.constant 24 : index
    %c0_31 = arith.constant 0 : index
    %99 = vector.load %arg11[%c24, %c0_31] : memref<64x32xf32, #tpu.memory_space<vmem>>, vector<8x32xf32>
    tpu.vector_store %arg11[%c24, %c0_31], %98 {strides = array<i32>} : memref<64x32xf32, #tpu.memory_space<vmem>>, vector<8x32xf32>,
    %100 = vector.extract_strided_slice %5 {offsets = [32, 0], sizes = [8, 128], strides = [1, 1]} : vector<64x128xf32> to vector<8x128xf32>
    %cst_32 = arith.constant dense<0.000000e+00> : vector<8x128xf32>
    %101 = tpu.matmul %98, %6, %cst_32 {dimension_numbers = #tpu.dot_dimension_numbers<[1], [0], [0], [1], [0, 0, 1, 1], [], []>} : vector<8x32xf32>, vector<32x128xf32>, vector<8x128xf32> -> vector<8x128xf32>
    %102 = arith.addf %100, %101 : vector<8x128xf32>
    %cst_33 = arith.constant 5.000000e-01 : f32
    %103 = vector.broadcast %cst_33 : f32 to vector<8x128xf32>
    %104 = arith.mulf %103, %102 : vector<8x128xf32>
    %105 = arith.select %9, %102, %104 : vector<8x128xi1>, vector<8x128xf32>
    %106 = math.tanh %105 : vector<8x128xf32>
    %cst_34 = arith.constant 5.000000e-01 : f32
    %107 = vector.broadcast %cst_34 : f32 to vector<8x128xf32>
    %108 = arith.mulf %107, %106 : vector<8x128xf32>
    %cst_35 = arith.constant 5.000000e-01 : f32
    %109 = vector.broadcast %cst_35 : f32 to vector<8x128xf32>
    %110 = arith.addf %108, %109 : vector<8x128xf32>
    %111 = arith.select %9, %106, %110 : vector<8x128xi1>, vector<8x128xf32>
    %112 = vector.extract_strided_slice %111 {offsets = [0, 0], sizes = [8, 32], strides = [1, 1]} : vector<8x128xf32> to vector<8x32xf32>
    %113 = vector.extract_strided_slice %111 {offsets = [0, 32], sizes = [8, 32], strides = [1, 1]} : vector<8x128xf32> to vector<8x32xf32>
    %114 = vector.extract_strided_slice %111 {offsets = [0, 64], sizes = [8, 32], strides = [1, 1]} : vector<8x128xf32> to vector<8x32xf32>
    %115 = vector.extract_strided_slice %111 {offsets = [0, 96], sizes = [8, 32], strides = [1, 1]} : vector<8x128xf32> to vector<8x32xf32>
    %116 = arith.mulf %113, %112 : vector<8x32xf32>
    %117 = arith.mulf %114, %96 : vector<8x32xf32>
    %118 = arith.addf %116, %117 : vector<8x32xf32>
    %119 = math.tanh %118 : vector<8x32xf32>
    %120 = arith.mulf %115, %119 : vector<8x32xf32>
    %c32 = arith.constant 32 : index
    %c0_36 = arith.constant 0 : index
    %121 = vector.load %arg11[%c32, %c0_36] : memref<64x32xf32, #tpu.memory_space<vmem>>, vector<8x32xf32>
    tpu.vector_store %arg11[%c32, %c0_36], %120 {strides = array<i32>} : memref<64x32xf32, #tpu.memory_space<vmem>>, vector<8x32xf32>,
    %122 = vector.extract_strided_slice %5 {offsets = [40, 0], sizes = [8, 128], strides = [1, 1]} : vector<64x128xf32> to vector<8x128xf32>
    %cst_37 = arith.constant dense<0.000000e+00> : vector<8x128xf32>
    %123 = tpu.matmul %120, %6, %cst_37 {dimension_numbers = #tpu.dot_dimension_numbers<[1], [0], [0], [1], [0, 0, 1, 1], [], []>} : vector<8x32xf32>, vector<32x128xf32>, vector<8x128xf32> -> vector<8x128xf32>
    %124 = arith.addf %122, %123 : vector<8x128xf32>
    %cst_38 = arith.constant 5.000000e-01 : f32
    %125 = vector.broadcast %cst_38 : f32 to vector<8x128xf32>
    %126 = arith.mulf %125, %124 : vector<8x128xf32>
    %127 = arith.select %9, %124, %126 : vector<8x128xi1>, vector<8x128xf32>
    %128 = math.tanh %127 : vector<8x128xf32>
    %cst_39 = arith.constant 5.000000e-01 : f32
    %129 = vector.broadcast %cst_39 : f32 to vector<8x128xf32>
    %130 = arith.mulf %129, %128 : vector<8x128xf32>
    %cst_40 = arith.constant 5.000000e-01 : f32
    %131 = vector.broadcast %cst_40 : f32 to vector<8x128xf32>
    %132 = arith.addf %130, %131 : vector<8x128xf32>
    %133 = arith.select %9, %128, %132 : vector<8x128xi1>, vector<8x128xf32>
    %134 = vector.extract_strided_slice %133 {offsets = [0, 0], sizes = [8, 32], strides = [1, 1]} : vector<8x128xf32> to vector<8x32xf32>
    %135 = vector.extract_strided_slice %133 {offsets = [0, 32], sizes = [8, 32], strides = [1, 1]} : vector<8x128xf32> to vector<8x32xf32>
    %136 = vector.extract_strided_slice %133 {offsets = [0, 64], sizes = [8, 32], strides = [1, 1]} : vector<8x128xf32> to vector<8x32xf32>
    %137 = vector.extract_strided_slice %133 {offsets = [0, 96], sizes = [8, 32], strides = [1, 1]} : vector<8x128xf32> to vector<8x32xf32>
    %138 = arith.mulf %135, %134 : vector<8x32xf32>
    %139 = arith.mulf %136, %118 : vector<8x32xf32>
    %140 = arith.addf %138, %139 : vector<8x32xf32>
    %141 = math.tanh %140 : vector<8x32xf32>
    %142 = arith.mulf %137, %141 : vector<8x32xf32>
    %c40 = arith.constant 40 : index
    %c0_41 = arith.constant 0 : index
    %143 = vector.load %arg11[%c40, %c0_41] : memref<64x32xf32, #tpu.memory_space<vmem>>, vector<8x32xf32>
    tpu.vector_store %arg11[%c40, %c0_41], %142 {strides = array<i32>} : memref<64x32xf32, #tpu.memory_space<vmem>>, vector<8x32xf32>,
    %144 = vector.extract_strided_slice %5 {offsets = [48, 0], sizes = [8, 128], strides = [1, 1]} : vector<64x128xf32> to vector<8x128xf32>
    %cst_42 = arith.constant dense<0.000000e+00> : vector<8x128xf32>
    %145 = tpu.matmul %142, %6, %cst_42 {dimension_numbers = #tpu.dot_dimension_numbers<[1], [0], [0], [1], [0, 0, 1, 1], [], []>} : vector<8x32xf32>, vector<32x128xf32>, vector<8x128xf32> -> vector<8x128xf32>
    %146 = arith.addf %144, %145 : vector<8x128xf32>
    %cst_43 = arith.constant 5.000000e-01 : f32
    %147 = vector.broadcast %cst_43 : f32 to vector<8x128xf32>
    %148 = arith.mulf %147, %146 : vector<8x128xf32>
    %149 = arith.select %9, %146, %148 : vector<8x128xi1>, vector<8x128xf32>
    %150 = math.tanh %149 : vector<8x128xf32>
    %cst_44 = arith.constant 5.000000e-01 : f32
    %151 = vector.broadcast %cst_44 : f32 to vector<8x128xf32>
    %152 = arith.mulf %151, %150 : vector<8x128xf32>
    %cst_45 = arith.constant 5.000000e-01 : f32
    %153 = vector.broadcast %cst_45 : f32 to vector<8x128xf32>
    %154 = arith.addf %152, %153 : vector<8x128xf32>
    %155 = arith.select %9, %150, %154 : vector<8x128xi1>, vector<8x128xf32>
    %156 = vector.extract_strided_slice %155 {offsets = [0, 0], sizes = [8, 32], strides = [1, 1]} : vector<8x128xf32> to vector<8x32xf32>
    %157 = vector.extract_strided_slice %155 {offsets = [0, 32], sizes = [8, 32], strides = [1, 1]} : vector<8x128xf32> to vector<8x32xf32>
    %158 = vector.extract_strided_slice %155 {offsets = [0, 64], sizes = [8, 32], strides = [1, 1]} : vector<8x128xf32> to vector<8x32xf32>
    %159 = vector.extract_strided_slice %155 {offsets = [0, 96], sizes = [8, 32], strides = [1, 1]} : vector<8x128xf32> to vector<8x32xf32>
    %160 = arith.mulf %157, %156 : vector<8x32xf32>
    %161 = arith.mulf %158, %140 : vector<8x32xf32>
    %162 = arith.addf %160, %161 : vector<8x32xf32>
    %163 = math.tanh %162 : vector<8x32xf32>
    %164 = arith.mulf %159, %163 : vector<8x32xf32>
    %c48 = arith.constant 48 : index
    %c0_46 = arith.constant 0 : index
    %165 = vector.load %arg11[%c48, %c0_46] : memref<64x32xf32, #tpu.memory_space<vmem>>, vector<8x32xf32>
    tpu.vector_store %arg11[%c48, %c0_46], %164 {strides = array<i32>} : memref<64x32xf32, #tpu.memory_space<vmem>>, vector<8x32xf32>,
    %166 = vector.extract_strided_slice %5 {offsets = [56, 0], sizes = [8, 128], strides = [1, 1]} : vector<64x128xf32> to vector<8x128xf32>
    %cst_47 = arith.constant dense<0.000000e+00> : vector<8x128xf32>
    %167 = tpu.matmul %164, %6, %cst_47 {dimension_numbers = #tpu.dot_dimension_numbers<[1], [0], [0], [1], [0, 0, 1, 1], [], []>} : vector<8x32xf32>, vector<32x128xf32>, vector<8x128xf32> -> vector<8x128xf32>
    %168 = arith.addf %166, %167 : vector<8x128xf32>
    %cst_48 = arith.constant 5.000000e-01 : f32
    %169 = vector.broadcast %cst_48 : f32 to vector<8x128xf32>
    %170 = arith.mulf %169, %168 : vector<8x128xf32>
    %171 = arith.select %9, %168, %170 : vector<8x128xi1>, vector<8x128xf32>
    %172 = math.tanh %171 : vector<8x128xf32>
    %cst_49 = arith.constant 5.000000e-01 : f32
    %173 = vector.broadcast %cst_49 : f32 to vector<8x128xf32>
    %174 = arith.mulf %173, %172 : vector<8x128xf32>
    %cst_50 = arith.constant 5.000000e-01 : f32
    %175 = vector.broadcast %cst_50 : f32 to vector<8x128xf32>
    %176 = arith.addf %174, %175 : vector<8x128xf32>
    %177 = arith.select %9, %172, %176 : vector<8x128xi1>, vector<8x128xf32>
    %178 = vector.extract_strided_slice %177 {offsets = [0, 0], sizes = [8, 32], strides = [1, 1]} : vector<8x128xf32> to vector<8x32xf32>
    %179 = vector.extract_strided_slice %177 {offsets = [0, 32], sizes = [8, 32], strides = [1, 1]} : vector<8x128xf32> to vector<8x32xf32>
    %180 = vector.extract_strided_slice %177 {offsets = [0, 64], sizes = [8, 32], strides = [1, 1]} : vector<8x128xf32> to vector<8x32xf32>
    %181 = vector.extract_strided_slice %177 {offsets = [0, 96], sizes = [8, 32], strides = [1, 1]} : vector<8x128xf32> to vector<8x32xf32>
    %182 = arith.mulf %179, %178 : vector<8x32xf32>
    %183 = arith.mulf %180, %162 : vector<8x32xf32>
    %184 = arith.addf %182, %183 : vector<8x32xf32>
    %185 = math.tanh %184 : vector<8x32xf32>
    %186 = arith.mulf %181, %185 : vector<8x32xf32>
    %c56 = arith.constant 56 : index
    %c0_51 = arith.constant 0 : index
    %187 = vector.load %arg11[%c56, %c0_51] : memref<64x32xf32, #tpu.memory_space<vmem>>, vector<8x32xf32>
    tpu.vector_store %arg11[%c56, %c0_51], %186 {strides = array<i32>} : memref<64x32xf32, #tpu.memory_space<vmem>>, vector<8x32xf32>,
    %188 = vector.extract_strided_slice %5 {offsets = [56, 0], sizes = [8, 128], strides = [1, 1]} : vector<64x128xf32> to vector<8x128xf32>
    %cst_52 = arith.constant dense<0.000000e+00> : vector<8x128xf32>
    %189 = tpu.matmul %186, %6, %cst_52 {dimension_numbers = #tpu.dot_dimension_numbers<[1], [0], [0], [1], [0, 0, 1, 1], [], []>} : vector<8x32xf32>, vector<32x128xf32>, vector<8x128xf32> -> vector<8x128xf32>
    %190 = arith.addf %188, %189 : vector<8x128xf32>
    %cst_53 = arith.constant 5.000000e-01 : f32
    %191 = vector.broadcast %cst_53 : f32 to vector<8x128xf32>
    %192 = arith.mulf %191, %190 : vector<8x128xf32>
    %193 = arith.select %9, %190, %192 : vector<8x128xi1>, vector<8x128xf32>
    %194 = math.tanh %193 : vector<8x128xf32>
    %cst_54 = arith.constant 5.000000e-01 : f32
    %195 = vector.broadcast %cst_54 : f32 to vector<8x128xf32>
    %196 = arith.mulf %195, %194 : vector<8x128xf32>
    %cst_55 = arith.constant 5.000000e-01 : f32
    %197 = vector.broadcast %cst_55 : f32 to vector<8x128xf32>
    %198 = arith.addf %196, %197 : vector<8x128xf32>
    %199 = arith.select %9, %194, %198 : vector<8x128xi1>, vector<8x128xf32>
    %200 = vector.extract_strided_slice %199 {offsets = [0, 0], sizes = [8, 32], strides = [1, 1]} : vector<8x128xf32> to vector<8x32xf32>
    %201 = vector.extract_strided_slice %199 {offsets = [0, 32], sizes = [8, 32], strides = [1, 1]} : vector<8x128xf32> to vector<8x32xf32>
    %202 = vector.extract_strided_slice %199 {offsets = [0, 64], sizes = [8, 32], strides = [1, 1]} : vector<8x128xf32> to vector<8x32xf32>
    %203 = vector.extract_strided_slice %199 {offsets = [0, 96], sizes = [8, 32], strides = [1, 1]} : vector<8x128xf32> to vector<8x32xf32>
    %204 = arith.mulf %201, %200 : vector<8x32xf32>
    %205 = arith.mulf %202, %184 : vector<8x32xf32>
    %206 = arith.addf %204, %205 : vector<8x32xf32>
    %207 = math.tanh %206 : vector<8x32xf32>
    %208 = arith.mulf %203, %207 : vector<8x32xf32>
    %c0_56 = arith.constant 0 : index
    %c0_57 = arith.constant 0 : index
    %209 = vector.load %arg12[%c0_56, %c0_57] : memref<64x32xf32, #tpu.memory_space<vmem>>, vector<8x32xf32>
    tpu.vector_store %arg12[%c0_56, %c0_57], %208 {strides = array<i32>} : memref<64x32xf32, #tpu.memory_space<vmem>>, vector<8x32xf32>,
    %210 = vector.extract_strided_slice %5 {offsets = [48, 0], sizes = [8, 128], strides = [1, 1]} : vector<64x128xf32> to vector<8x128xf32>
    %cst_58 = arith.constant dense<0.000000e+00> : vector<8x128xf32>
    %211 = tpu.matmul %208, %6, %cst_58 {dimension_numbers = #tpu.dot_dimension_numbers<[1], [0], [0], [1], [0, 0, 1, 1], [], []>} : vector<8x32xf32>, vector<32x128xf32>, vector<8x128xf32> -> vector<8x128xf32>
    %212 = arith.addf %210, %211 : vector<8x128xf32>
    %cst_59 = arith.constant 5.000000e-01 : f32
    %213 = vector.broadcast %cst_59 : f32 to vector<8x128xf32>
    %214 = arith.mulf %213, %212 : vector<8x128xf32>
    %215 = arith.select %9, %212, %214 : vector<8x128xi1>, vector<8x128xf32>
    %216 = math.tanh %215 : vector<8x128xf32>
    %cst_60 = arith.constant 5.000000e-01 : f32
    %217 = vector.broadcast %cst_60 : f32 to vector<8x128xf32>
    %218 = arith.mulf %217, %216 : vector<8x128xf32>
    %cst_61 = arith.constant 5.000000e-01 : f32
    %219 = vector.broadcast %cst_61 : f32 to vector<8x128xf32>
    %220 = arith.addf %218, %219 : vector<8x128xf32>
    %221 = arith.select %9, %216, %220 : vector<8x128xi1>, vector<8x128xf32>
    %222 = vector.extract_strided_slice %221 {offsets = [0, 0], sizes = [8, 32], strides = [1, 1]} : vector<8x128xf32> to vector<8x32xf32>
    %223 = vector.extract_strided_slice %221 {offsets = [0, 32], sizes = [8, 32], strides = [1, 1]} : vector<8x128xf32> to vector<8x32xf32>
    %224 = vector.extract_strided_slice %221 {offsets = [0, 64], sizes = [8, 32], strides = [1, 1]} : vector<8x128xf32> to vector<8x32xf32>
    %225 = vector.extract_strided_slice %221 {offsets = [0, 96], sizes = [8, 32], strides = [1, 1]} : vector<8x128xf32> to vector<8x32xf32>
    %226 = arith.mulf %223, %222 : vector<8x32xf32>
    %227 = arith.mulf %224, %206 : vector<8x32xf32>
    %228 = arith.addf %226, %227 : vector<8x32xf32>
    %229 = math.tanh %228 : vector<8x32xf32>
    %230 = arith.mulf %225, %229 : vector<8x32xf32>
    %c8_62 = arith.constant 8 : index
    %c0_63 = arith.constant 0 : index
    %231 = vector.load %arg12[%c8_62, %c0_63] : memref<64x32xf32, #tpu.memory_space<vmem>>, vector<8x32xf32>
    tpu.vector_store %arg12[%c8_62, %c0_63], %230 {strides = array<i32>} : memref<64x32xf32, #tpu.memory_space<vmem>>, vector<8x32xf32>,
    %232 = vector.extract_strided_slice %5 {offsets = [40, 0], sizes = [8, 128], strides = [1, 1]} : vector<64x128xf32> to vector<8x128xf32>
    %cst_64 = arith.constant dense<0.000000e+00> : vector<8x128xf32>
    %233 = tpu.matmul %230, %6, %cst_64 {dimension_numbers = #tpu.dot_dimension_numbers<[1], [0], [0], [1], [0, 0, 1, 1], [], []>} : vector<8x32xf32>, vector<32x128xf32>, vector<8x128xf32> -> vector<8x128xf32>
    %234 = arith.addf %232, %233 : vector<8x128xf32>
    %cst_65 = arith.constant 5.000000e-01 : f32
    %235 = vector.broadcast %cst_65 : f32 to vector<8x128xf32>
    %236 = arith.mulf %235, %234 : vector<8x128xf32>
    %237 = arith.select %9, %234, %236 : vector<8x128xi1>, vector<8x128xf32>
    %238 = math.tanh %237 : vector<8x128xf32>
    %cst_66 = arith.constant 5.000000e-01 : f32
    %239 = vector.broadcast %cst_66 : f32 to vector<8x128xf32>
    %240 = arith.mulf %239, %238 : vector<8x128xf32>
    %cst_67 = arith.constant 5.000000e-01 : f32
    %241 = vector.broadcast %cst_67 : f32 to vector<8x128xf32>
    %242 = arith.addf %240, %241 : vector<8x128xf32>
    %243 = arith.select %9, %238, %242 : vector<8x128xi1>, vector<8x128xf32>
    %244 = vector.extract_strided_slice %243 {offsets = [0, 0], sizes = [8, 32], strides = [1, 1]} : vector<8x128xf32> to vector<8x32xf32>
    %245 = vector.extract_strided_slice %243 {offsets = [0, 32], sizes = [8, 32], strides = [1, 1]} : vector<8x128xf32> to vector<8x32xf32>
    %246 = vector.extract_strided_slice %243 {offsets = [0, 64], sizes = [8, 32], strides = [1, 1]} : vector<8x128xf32> to vector<8x32xf32>
    %247 = vector.extract_strided_slice %243 {offsets = [0, 96], sizes = [8, 32], strides = [1, 1]} : vector<8x128xf32> to vector<8x32xf32>
    %248 = arith.mulf %245, %244 : vector<8x32xf32>
    %249 = arith.mulf %246, %228 : vector<8x32xf32>
    %250 = arith.addf %248, %249 : vector<8x32xf32>
    %251 = math.tanh %250 : vector<8x32xf32>
    %252 = arith.mulf %247, %251 : vector<8x32xf32>
    %c16_68 = arith.constant 16 : index
    %c0_69 = arith.constant 0 : index
    %253 = vector.load %arg12[%c16_68, %c0_69] : memref<64x32xf32, #tpu.memory_space<vmem>>, vector<8x32xf32>
    tpu.vector_store %arg12[%c16_68, %c0_69], %252 {strides = array<i32>} : memref<64x32xf32, #tpu.memory_space<vmem>>, vector<8x32xf32>,
    %254 = vector.extract_strided_slice %5 {offsets = [32, 0], sizes = [8, 128], strides = [1, 1]} : vector<64x128xf32> to vector<8x128xf32>
    %cst_70 = arith.constant dense<0.000000e+00> : vector<8x128xf32>
    %255 = tpu.matmul %252, %6, %cst_70 {dimension_numbers = #tpu.dot_dimension_numbers<[1], [0], [0], [1], [0, 0, 1, 1], [], []>} : vector<8x32xf32>, vector<32x128xf32>, vector<8x128xf32> -> vector<8x128xf32>
    %256 = arith.addf %254, %255 : vector<8x128xf32>
    %cst_71 = arith.constant 5.000000e-01 : f32
    %257 = vector.broadcast %cst_71 : f32 to vector<8x128xf32>
    %258 = arith.mulf %257, %256 : vector<8x128xf32>
    %259 = arith.select %9, %256, %258 : vector<8x128xi1>, vector<8x128xf32>
    %260 = math.tanh %259 : vector<8x128xf32>
    %cst_72 = arith.constant 5.000000e-01 : f32
    %261 = vector.broadcast %cst_72 : f32 to vector<8x128xf32>
    %262 = arith.mulf %261, %260 : vector<8x128xf32>
    %cst_73 = arith.constant 5.000000e-01 : f32
    %263 = vector.broadcast %cst_73 : f32 to vector<8x128xf32>
    %264 = arith.addf %262, %263 : vector<8x128xf32>
    %265 = arith.select %9, %260, %264 : vector<8x128xi1>, vector<8x128xf32>
    %266 = vector.extract_strided_slice %265 {offsets = [0, 0], sizes = [8, 32], strides = [1, 1]} : vector<8x128xf32> to vector<8x32xf32>
    %267 = vector.extract_strided_slice %265 {offsets = [0, 32], sizes = [8, 32], strides = [1, 1]} : vector<8x128xf32> to vector<8x32xf32>
    %268 = vector.extract_strided_slice %265 {offsets = [0, 64], sizes = [8, 32], strides = [1, 1]} : vector<8x128xf32> to vector<8x32xf32>
    %269 = vector.extract_strided_slice %265 {offsets = [0, 96], sizes = [8, 32], strides = [1, 1]} : vector<8x128xf32> to vector<8x32xf32>
    %270 = arith.mulf %267, %266 : vector<8x32xf32>
    %271 = arith.mulf %268, %250 : vector<8x32xf32>
    %272 = arith.addf %270, %271 : vector<8x32xf32>
    %273 = math.tanh %272 : vector<8x32xf32>
    %274 = arith.mulf %269, %273 : vector<8x32xf32>
    %c24_74 = arith.constant 24 : index
    %c0_75 = arith.constant 0 : index
    %275 = vector.load %arg12[%c24_74, %c0_75] : memref<64x32xf32, #tpu.memory_space<vmem>>, vector<8x32xf32>
    tpu.vector_store %arg12[%c24_74, %c0_75], %274 {strides = array<i32>} : memref<64x32xf32, #tpu.memory_space<vmem>>, vector<8x32xf32>,
    %276 = vector.extract_strided_slice %5 {offsets = [24, 0], sizes = [8, 128], strides = [1, 1]} : vector<64x128xf32> to vector<8x128xf32>
    %cst_76 = arith.constant dense<0.000000e+00> : vector<8x128xf32>
    %277 = tpu.matmul %274, %6, %cst_76 {dimension_numbers = #tpu.dot_dimension_numbers<[1], [0], [0], [1], [0, 0, 1, 1], [], []>} : vector<8x32xf32>, vector<32x128xf32>, vector<8x128xf32> -> vector<8x128xf32>
    %278 = arith.addf %276, %277 : vector<8x128xf32>
    %cst_77 = arith.constant 5.000000e-01 : f32
    %279 = vector.broadcast %cst_77 : f32 to vector<8x128xf32>
    %280 = arith.mulf %279, %278 : vector<8x128xf32>
    %281 = arith.select %9, %278, %280 : vector<8x128xi1>, vector<8x128xf32>
    %282 = math.tanh %281 : vector<8x128xf32>
    %cst_78 = arith.constant 5.000000e-01 : f32
    %283 = vector.broadcast %cst_78 : f32 to vector<8x128xf32>
    %284 = arith.mulf %283, %282 : vector<8x128xf32>
    %cst_79 = arith.constant 5.000000e-01 : f32
    %285 = vector.broadcast %cst_79 : f32 to vector<8x128xf32>
    %286 = arith.addf %284, %285 : vector<8x128xf32>
    %287 = arith.select %9, %282, %286 : vector<8x128xi1>, vector<8x128xf32>
    %288 = vector.extract_strided_slice %287 {offsets = [0, 0], sizes = [8, 32], strides = [1, 1]} : vector<8x128xf32> to vector<8x32xf32>
    %289 = vector.extract_strided_slice %287 {offsets = [0, 32], sizes = [8, 32], strides = [1, 1]} : vector<8x128xf32> to vector<8x32xf32>
    %290 = vector.extract_strided_slice %287 {offsets = [0, 64], sizes = [8, 32], strides = [1, 1]} : vector<8x128xf32> to vector<8x32xf32>
    %291 = vector.extract_strided_slice %287 {offsets = [0, 96], sizes = [8, 32], strides = [1, 1]} : vector<8x128xf32> to vector<8x32xf32>
    %292 = arith.mulf %289, %288 : vector<8x32xf32>
    %293 = arith.mulf %290, %272 : vector<8x32xf32>
    %294 = arith.addf %292, %293 : vector<8x32xf32>
    %295 = math.tanh %294 : vector<8x32xf32>
    %296 = arith.mulf %291, %295 : vector<8x32xf32>
    %c32_80 = arith.constant 32 : index
    %c0_81 = arith.constant 0 : index
    %297 = vector.load %arg12[%c32_80, %c0_81] : memref<64x32xf32, #tpu.memory_space<vmem>>, vector<8x32xf32>
    tpu.vector_store %arg12[%c32_80, %c0_81], %296 {strides = array<i32>} : memref<64x32xf32, #tpu.memory_space<vmem>>, vector<8x32xf32>,
    %298 = vector.extract_strided_slice %5 {offsets = [16, 0], sizes = [8, 128], strides = [1, 1]} : vector<64x128xf32> to vector<8x128xf32>
    %cst_82 = arith.constant dense<0.000000e+00> : vector<8x128xf32>
    %299 = tpu.matmul %296, %6, %cst_82 {dimension_numbers = #tpu.dot_dimension_numbers<[1], [0], [0], [1], [0, 0, 1, 1], [], []>} : vector<8x32xf32>, vector<32x128xf32>, vector<8x128xf32> -> vector<8x128xf32>
    %300 = arith.addf %298, %299 : vector<8x128xf32>
    %cst_83 = arith.constant 5.000000e-01 : f32
    %301 = vector.broadcast %cst_83 : f32 to vector<8x128xf32>
    %302 = arith.mulf %301, %300 : vector<8x128xf32>
    %303 = arith.select %9, %300, %302 : vector<8x128xi1>, vector<8x128xf32>
    %304 = math.tanh %303 : vector<8x128xf32>
    %cst_84 = arith.constant 5.000000e-01 : f32
    %305 = vector.broadcast %cst_84 : f32 to vector<8x128xf32>
    %306 = arith.mulf %305, %304 : vector<8x128xf32>
    %cst_85 = arith.constant 5.000000e-01 : f32
    %307 = vector.broadcast %cst_85 : f32 to vector<8x128xf32>
    %308 = arith.addf %306, %307 : vector<8x128xf32>
    %309 = arith.select %9, %304, %308 : vector<8x128xi1>, vector<8x128xf32>
    %310 = vector.extract_strided_slice %309 {offsets = [0, 0], sizes = [8, 32], strides = [1, 1]} : vector<8x128xf32> to vector<8x32xf32>
    %311 = vector.extract_strided_slice %309 {offsets = [0, 32], sizes = [8, 32], strides = [1, 1]} : vector<8x128xf32> to vector<8x32xf32>
    %312 = vector.extract_strided_slice %309 {offsets = [0, 64], sizes = [8, 32], strides = [1, 1]} : vector<8x128xf32> to vector<8x32xf32>
    %313 = vector.extract_strided_slice %309 {offsets = [0, 96], sizes = [8, 32], strides = [1, 1]} : vector<8x128xf32> to vector<8x32xf32>
    %314 = arith.mulf %311, %310 : vector<8x32xf32>
    %315 = arith.mulf %312, %294 : vector<8x32xf32>
    %316 = arith.addf %314, %315 : vector<8x32xf32>
    %317 = math.tanh %316 : vector<8x32xf32>
    %318 = arith.mulf %313, %317 : vector<8x32xf32>
    %c40_86 = arith.constant 40 : index
    %c0_87 = arith.constant 0 : index
    %319 = vector.load %arg12[%c40_86, %c0_87] : memref<64x32xf32, #tpu.memory_space<vmem>>, vector<8x32xf32>
    tpu.vector_store %arg12[%c40_86, %c0_87], %318 {strides = array<i32>} : memref<64x32xf32, #tpu.memory_space<vmem>>, vector<8x32xf32>,
    %320 = vector.extract_strided_slice %5 {offsets = [8, 0], sizes = [8, 128], strides = [1, 1]} : vector<64x128xf32> to vector<8x128xf32>
    %cst_88 = arith.constant dense<0.000000e+00> : vector<8x128xf32>
    %321 = tpu.matmul %318, %6, %cst_88 {dimension_numbers = #tpu.dot_dimension_numbers<[1], [0], [0], [1], [0, 0, 1, 1], [], []>} : vector<8x32xf32>, vector<32x128xf32>, vector<8x128xf32> -> vector<8x128xf32>
    %322 = arith.addf %320, %321 : vector<8x128xf32>
    %cst_89 = arith.constant 5.000000e-01 : f32
    %323 = vector.broadcast %cst_89 : f32 to vector<8x128xf32>
    %324 = arith.mulf %323, %322 : vector<8x128xf32>
    %325 = arith.select %9, %322, %324 : vector<8x128xi1>, vector<8x128xf32>
    %326 = math.tanh %325 : vector<8x128xf32>
    %cst_90 = arith.constant 5.000000e-01 : f32
    %327 = vector.broadcast %cst_90 : f32 to vector<8x128xf32>
    %328 = arith.mulf %327, %326 : vector<8x128xf32>
    %cst_91 = arith.constant 5.000000e-01 : f32
    %329 = vector.broadcast %cst_91 : f32 to vector<8x128xf32>
    %330 = arith.addf %328, %329 : vector<8x128xf32>
    %331 = arith.select %9, %326, %330 : vector<8x128xi1>, vector<8x128xf32>
    %332 = vector.extract_strided_slice %331 {offsets = [0, 0], sizes = [8, 32], strides = [1, 1]} : vector<8x128xf32> to vector<8x32xf32>
    %333 = vector.extract_strided_slice %331 {offsets = [0, 32], sizes = [8, 32], strides = [1, 1]} : vector<8x128xf32> to vector<8x32xf32>
    %334 = vector.extract_strided_slice %331 {offsets = [0, 64], sizes = [8, 32], strides = [1, 1]} : vector<8x128xf32> to vector<8x32xf32>
    %335 = vector.extract_strided_slice %331 {offsets = [0, 96], sizes = [8, 32], strides = [1, 1]} : vector<8x128xf32> to vector<8x32xf32>
    %336 = arith.mulf %333, %332 : vector<8x32xf32>
    %337 = arith.mulf %334, %316 : vector<8x32xf32>
    %338 = arith.addf %336, %337 : vector<8x32xf32>
    %339 = math.tanh %338 : vector<8x32xf32>
    %340 = arith.mulf %335, %339 : vector<8x32xf32>
    %c48_92 = arith.constant 48 : index
    %c0_93 = arith.constant 0 : index
    %341 = vector.load %arg12[%c48_92, %c0_93] : memref<64x32xf32, #tpu.memory_space<vmem>>, vector<8x32xf32>
    tpu.vector_store %arg12[%c48_92, %c0_93], %340 {strides = array<i32>} : memref<64x32xf32, #tpu.memory_space<vmem>>, vector<8x32xf32>,
    %342 = vector.extract_strided_slice %5 {offsets = [0, 0], sizes = [8, 128], strides = [1, 1]} : vector<64x128xf32> to vector<8x128xf32>
    %cst_94 = arith.constant dense<0.000000e+00> : vector<8x128xf32>
    %343 = tpu.matmul %340, %6, %cst_94 {dimension_numbers = #tpu.dot_dimension_numbers<[1], [0], [0], [1], [0, 0, 1, 1], [], []>} : vector<8x32xf32>, vector<32x128xf32>, vector<8x128xf32> -> vector<8x128xf32>
    %344 = arith.addf %342, %343 : vector<8x128xf32>
    %cst_95 = arith.constant 5.000000e-01 : f32
    %345 = vector.broadcast %cst_95 : f32 to vector<8x128xf32>
    %346 = arith.mulf %345, %344 : vector<8x128xf32>
    %347 = arith.select %9, %344, %346 : vector<8x128xi1>, vector<8x128xf32>
    %348 = math.tanh %347 : vector<8x128xf32>
    %cst_96 = arith.constant 5.000000e-01 : f32
    %349 = vector.broadcast %cst_96 : f32 to vector<8x128xf32>
    %350 = arith.mulf %349, %348 : vector<8x128xf32>
    %cst_97 = arith.constant 5.000000e-01 : f32
    %351 = vector.broadcast %cst_97 : f32 to vector<8x128xf32>
    %352 = arith.addf %350, %351 : vector<8x128xf32>
    %353 = arith.select %9, %348, %352 : vector<8x128xi1>, vector<8x128xf32>
    %354 = vector.extract_strided_slice %353 {offsets = [0, 0], sizes = [8, 32], strides = [1, 1]} : vector<8x128xf32> to vector<8x32xf32>
    %355 = vector.extract_strided_slice %353 {offsets = [0, 32], sizes = [8, 32], strides = [1, 1]} : vector<8x128xf32> to vector<8x32xf32>
    %356 = vector.extract_strided_slice %353 {offsets = [0, 64], sizes = [8, 32], strides = [1, 1]} : vector<8x128xf32> to vector<8x32xf32>
    %357 = vector.extract_strided_slice %353 {offsets = [0, 96], sizes = [8, 32], strides = [1, 1]} : vector<8x128xf32> to vector<8x32xf32>
    %358 = arith.mulf %355, %354 : vector<8x32xf32>
    %359 = arith.mulf %356, %338 : vector<8x32xf32>
    %360 = arith.addf %358, %359 : vector<8x32xf32>
    %361 = math.tanh %360 : vector<8x32xf32>
    %362 = arith.mulf %357, %361 : vector<8x32xf32>
    %c56_98 = arith.constant 56 : index
    %c0_99 = arith.constant 0 : index
    %363 = vector.load %arg12[%c56_98, %c0_99] : memref<64x32xf32, #tpu.memory_space<vmem>>, vector<8x32xf32>
    tpu.vector_store %arg12[%c56_98, %c0_99], %362 {strides = array<i32>} : memref<64x32xf32, #tpu.memory_space<vmem>>, vector<8x32xf32>,
    %c0_100 = arith.constant 0 : index
    %c0_101 = arith.constant 0 : index
    %364 = vector.load %arg11[%c0_100, %c0_101] : memref<64x32xf32, #tpu.memory_space<vmem>>, vector<64x32xf32>
    %c0_102 = arith.constant 0 : index
    %c0_103 = arith.constant 0 : index
    %365 = vector.load %arg7[%c0_102, %c0_103] : memref<32x32xf32, #tpu.memory_space<vmem>>, vector<32x32xf32>
    %cst_104 = arith.constant dense<0.000000e+00> : vector<64x32xf32>
    %366 = tpu.matmul %364, %365, %cst_104 {dimension_numbers = #tpu.dot_dimension_numbers<[1], [0], [0], [1], [0, 0, 1, 1], [], []>} : vector<64x32xf32>, vector<32x32xf32>, vector<64x32xf32> -> vector<64x32xf32>
    %c0_105 = arith.constant 0 : index
    %c0_106 = arith.constant 0 : index
    %367 = vector.load %arg12[%c0_105, %c0_106] : memref<64x32xf32, #tpu.memory_space<vmem>>, vector<64x32xf32>
    %c0_107 = arith.constant 0 : index
    %c0_108 = arith.constant 0 : index
    %368 = vector.load %arg8[%c0_107, %c0_108] : memref<32x32xf32, #tpu.memory_space<vmem>>, vector<32x32xf32>
    %cst_109 = arith.constant dense<0.000000e+00> : vector<64x32xf32>
    %369 = tpu.matmul %367, %368, %cst_109 {dimension_numbers = #tpu.dot_dimension_numbers<[1], [0], [0], [1], [0, 0, 1, 1], [], []>} : vector<64x32xf32>, vector<32x32xf32>, vector<64x32xf32> -> vector<64x32xf32>
    %370 = arith.addf %366, %369 : vector<64x32xf32>
    %c0_110 = arith.constant 0 : index
    %c0_111 = arith.constant 0 : index
    %371 = vector.load %arg9[%c0_110, %c0_111] : memref<1x32xf32, #tpu.memory_space<vmem>>, vector<1x32xf32>
    %372 = vector.broadcast %371 : vector<1x32xf32> to vector<64x32xf32>
    %373 = arith.addf %370, %372 : vector<64x32xf32>
    %cst_112 = arith.constant 0.000000e+00 : f32
    %374 = vector.broadcast %cst_112 : f32 to vector<64x32xf32>
    %375 = arith.cmpf oge, %373, %374 : vector<64x32xf32>
    %cst_113 = arith.constant 0.00999999977 : f32
    %376 = vector.broadcast %cst_113 : f32 to vector<64x32xf32>
    %377 = arith.mulf %376, %373 : vector<64x32xf32>
    %378 = arith.select %375, %373, %377 : vector<64x32xi1>, vector<64x32xf32>
    %c0_114 = arith.constant 0 : index
    %c0_115 = arith.constant 0 : index
    %379 = vector.load %arg10[%c0_114, %c0_115] : memref<64x32xf32, #tpu.memory_space<vmem>>, vector<64x32xf32>
    tpu.vector_store %arg10[%c0_114, %c0_115], %378 {strides = array<i32>} : memref<64x32xf32, #tpu.memory_space<vmem>>, vector<64x32xf32>,
    return
  }
  func.func @transform_0(%arg0: i32) -> (i32, i32) {
    %c0_i32 = arith.constant 0 : i32
    %c0_i32_0 = arith.constant 0 : i32
    %c0_i32_1 = arith.constant 0 : i32
    return %c0_i32, %c0_i32_0 : i32, i32
  }
  func.func @transform_1(%arg0: i32) -> (i32, i32) {
    %c0_i32 = arith.constant 0 : i32
    %c0_i32_0 = arith.constant 0 : i32
    %c0_i32_1 = arith.constant 0 : i32
    return %c0_i32, %c0_i32_0 : i32, i32
  }
  func.func @transform_2(%arg0: i32) -> (i32, i32) {
    %c0_i32 = arith.constant 0 : i32
    %c0_i32_0 = arith.constant 0 : i32
    %c0_i32_1 = arith.constant 0 : i32
    return %c0_i32, %c0_i32_0 : i32, i32
  }
  func.func @transform_3(%arg0: i32) -> (i32, i32) {
    %c0_i32 = arith.constant 0 : i32
    %c0_i32_0 = arith.constant 0 : i32
    %c0_i32_1 = arith.constant 0 : i32
    return %c0_i32, %c0_i32_0 : i32, i32
  }
  func.func @transform_4(%arg0: i32) -> (i32, i32) {
    %c0_i32 = arith.constant 0 : i32
    %c0_i32_0 = arith.constant 0 : i32
    %c0_i32_1 = arith.constant 0 : i32
    return %c0_i32, %c0_i32_0 : i32, i32
  }
  func.func @transform_5(%arg0: i32) -> (i32, i32) {
    %c0_i32 = arith.constant 0 : i32
    %c0_i32_0 = arith.constant 0 : i32
    %c0_i32_1 = arith.constant 0 : i32
    return %c0_i32, %c0_i32_0 : i32, i32
  }
  func.func @transform_6(%arg0: i32) -> (i32, i32) {
    %c0_i32 = arith.constant 0 : i32
    %c0_i32_0 = arith.constant 0 : i32
    %c0_i32_1 = arith.constant 0 : i32
    return %c0_i32, %c0_i32_0 : i32, i32
  }
  func.func @transform_7(%arg0: i32) -> (i32, i32) {
    %c0_i32 = arith.constant 0 : i32
    %c0_i32_0 = arith.constant 0 : i32
    %c0_i32_1 = arith.constant 0 : i32
    return %c0_i32, %c0_i32_0 : i32, i32
  }
  func.func @transform_8(%arg0: i32) -> (i32, i32) {
    %c0_i32 = arith.constant 0 : i32
    %c0_i32_0 = arith.constant 0 : i32
    %c0_i32_1 = arith.constant 0 : i32
    return %c0_i32, %c0_i32_0 : i32, i32
  }
  func.func @transform_9(%arg0: i32) -> (i32, i32) {
    %c0_i32 = arith.constant 0 : i32
    %c0_i32_0 = arith.constant 0 : i32
    %c0_i32_1 = arith.constant 0 : i32
    return %c0_i32, %c0_i32_0 : i32, i32
  }
}

</mosaic_0001>

<bundles_post_ra>
// kernel: depth_lstm_forward.2
= control target key start
LH: loop header
LB: loop body
LE: loop exit
PB: predicated region body
PF: predicated region fallthrough
CT: control target
= control target key end

     0   :  { %v2671_v2 = vmov 0.0   ;;  %vm2672_vm0 = vmmov 0   ;;  %vm51_vm1 = vcmask 261120   ;;  %s2673_s11 = smov 64   ;;  %v185_v13 = vlaneseq  ;;  %s2675_s12 = smov 96   ;;  %s3278_s3 = inlined_call_operand.vmem [shape: f32[32,128], index: 3, kind: input, shape index: {}]   ;;  %s3279_s4 = inlined_call_operand.vmem [shape: f32[32,128], index: 4, kind: input, shape index: {}]   ;;  %s3280_s0 = inlined_call_operand.vmem [shape: f32[64,32], index: 0, kind: input, shape index: {}]   ;;  %s3281_s1 = inlined_call_operand.vmem [shape: f32[8,32], index: 1, kind: input, shape index: {}]   ;;  %s3282_s2 = inlined_call_operand.vmem [shape: f32[8,32], index: 2, kind: input, shape index: {}]   ;;  %s3283_s5 = inlined_call_operand.vmem [shape: f32[1,128], index: 5, kind: input, shape index: {}]   ;;  %s3284_s7 = inlined_call_operand.vmem [shape: f32[32,32], index: 7, kind: input, shape index: {}]   ;;  %s3285_s6 = inlined_call_operand.vmem [shape: f32[32,32], index: 6, kind: input, shape index: {}]   ;;  %s3286_s8 = inlined_call_operand.vmem [shape: f32[1,32], index: 8, kind: input, shape index: {}]   ;;  %s3287_s9 = inlined_call_operand.vmem [shape: f32[64,32], index: 9, kind: output, shape index: {}]  }
   0x1   :  { %v43_v0 = vld [vmem:[%s3278_s3 + $0x18] sm:$0xff]  ;;  %v42_v1 = vld [vmem:[%s3278_s3 + $0x10] sm:$0xff]  ;;  %2382 = vmatprep.subr.mxu1 %v2671_v2  ;;  %2390 = vmatprep.mubr.msk.f32.mxu1 %vm2672_vm0, %v2671_v2  ;;  %v41_v5 = vld [vmem:[%s3278_s3 + $0x8] sm:$0xff] }
   0x2   :  { %v2736_v3 = vld [vmem:[%s3279_s4 + $0x18] sm:$0xff]  ;;  %2362 = vmatprep.subr.mxu0 %v43_v0  ;;  %v2744_v4 = vld [vmem:[%s3279_s4 + $0x10] sm:$0xff]  ;;  %v32_v6 = vld [vmem:[%s3280_s0] sm:$0xff]  ;;  %v2809_v18 = vand.u32 127, %v185_v13 }
   0x3   :  { %2383 = vmatpush3.msra.mxu1 %v2736_v3  ;;  %2363 = vmatpush3.msra.mxu0 %v43_v0  ;;  %v2757_v7 = vld [vmem:[%s3279_s4 + $0x8] sm:$0xff]  ;;  %v40_v8 = vld [vmem:[%s3278_s3] sm:$0xff]  ;;  %v34_v54 = vld [vmem:[%s3280_s0 + $0x10] sm:$0xff] }
   0x4   :  { %2384 = vmatprep.subr.mxu1 %v2671_v2  ;;  %2364 = vmatprep.subr.mxu0 %v42_v1  ;;  %v2767_v9 = vld [vmem:[%s3279_s4] sm:$0xff]  ;;  %v33_v10 = vld [vmem:[%s3280_s0 + $0x8] sm:$0xff]  ;;  %vm187_vm2 = vcmp.lt.s32.totalorder %v2809_v18, 32  ;;  %v35_v55 = vld [vmem:[%s3280_s0 + $0x18] sm:$0xff] }
   0x5   :  { %2385 = vmatpush3.msra.mxu1 %v2744_v4  ;;  %2365 = vmatpush3.msra.mxu0 %v42_v1  ;;  %v188_v11 = vld [vmem:[%s3281_s1] sm:$0xff]  ;;  %v37_v57 = vld [vmem:[%s3280_s0 + $0x28] sm:$0xff]  ;;  %v38_v58 = vld [vmem:[%s3280_s0 + $0x30] sm:$0xff] }
   0x6   :  { %2386 = vmatprep.subr.mxu1 %v2671_v2  ;;  %2366 = vmatprep.subr.mxu0 %v41_v5  ;;  %v189_v12 = vld [vmem:[%s3282_s2] sm:$0xff]  ;;  %v39_v59 = vld [vmem:[%s3280_s0 + $0x38] sm:$0xff] }
   0x7   :  { %2370 = vmatprep.mubr.msk.f32.mxu0 %vm51_vm1, %v32_v6  ;;  %2367 = vmatpush3.msra.mxu0 %v41_v5  ;;  %v2807_v16 = vld [vmem:[%s3283_s5] ss:$0 sm:$0xff]  ;;  %s2674_s5 = smov 32  }
   0x8   :  { %2387 = vmatpush3.msra.mxu1 %v2757_v7  ;;  %2368 = vmatprep.subr.mxu0 %v40_v8  ;;  %v36_v56 = vld [vmem:[%s3280_s0 + $0x20] sm:$0xff] }
   0x9   :  { %2388 = vmatprep.subr.mxu1 %v2671_v2  ;;  %2369 = vmatpush3.msra.mxu0 %v40_v8 }
   0xa   :  { %2389 = vmatpush3.msra.mxu1 %v2767_v9  ;;  %2371 = vmatmul.mubr.msk.f32.vlgmr.msra.gmra.mxu0 %vm51_vm1, %v33_v10 }
   0xb   :  { %2391 = vmatmul.mubr.msk.f32.vlgmr.msra.gmra.mxu1 %vm51_vm1, %v188_v11  ;;  %276 = vrot.lane.b32.xlu0 %v189_v12, %s2673_s11 }
   0xc   :  { %2393 = vmatprep.subr.mxu1 %v2671_v2  ;;  %2401 = vmatprep.mubr.msk.f32.mxu1 %vm2672_vm0, %v2671_v2 }
   0xd   :  { %2394 = vmatpush3.msra.mxu1 %v2736_v3  ;;  %2404 = vmatprep.subr.mxu0 %v2671_v2 }
   0xe   :  { %2395 = vmatprep.subr.mxu1 %v2671_v2  ;;  %2405 = vmatpush3.msra.mxu0 %v2736_v3 }
   0xf   :  { %2396 = vmatpush3.msra.mxu1 %v2744_v4  ;;  %2406 = vmatprep.subr.mxu0 %v2671_v2 }
  0x10   :  { %2397 = vmatprep.subr.mxu1 %v2671_v2  ;;  %2407 = vmatpush3.msra.mxu0 %v2744_v4 }
  0x11   :  { %2398 = vmatpush3.msra.mxu1 %v2757_v7  ;;  %2408 = vmatprep.subr.mxu0 %v2671_v2 }
  0x12   :  { %2399 = vmatprep.subr.mxu1 %v2671_v2  ;;  %2409 = vmatpush3.msra.mxu0 %v2757_v7 }
  0x13   :  { %2400 = vmatpush3.msra.mxu1 %v2767_v9  ;;  %2410 = vmatprep.subr.mxu0 %v2671_v2 }
  0x14   :  { %2415 = vmatprep.subr.mxu1 %v2671_v2  ;;  %2411 = vmatpush3.msra.mxu0 %v2767_v9 }
  0x15   :  { %2426 = vmatprep.subr.mxu0 %v2671_v2  ;;  %2373 = vmatprep.mubr.msk.f32.mxu0 %vm51_vm1, %v34_v54 }
  0x16   :  { %2374 = vmatmul.mubr.msk.f32.gmra.mxu0 %vm51_vm1, %v35_v55 }
  0x17   :  { %2376 = vmatprep.mubr.msk.f32.mxu0 %vm51_vm1, %v36_v56 }
  0x1a   :  { %2377 = vmatmul.mubr.msk.f32.gmra.mxu0 %vm51_vm1, %v37_v57 }
  0x1b   :  { %2379 = vmatprep.mubr.msk.f32.mxu0 %vm51_vm1, %v38_v58 }
  0x1e   :  { %2380 = vmatmul.mubr.msk.f32.gmra.mxu0 %vm51_vm1, %v39_v59 }
  0x1f   :  { %2412 = vmatprep.mubr.msk.f32.mxu0 %vm2672_vm0, %v2671_v2 }
  0x7d   :  { %v277_v26 = vpop.permute.xlu0 %276 }
  0xca   :  { %v2372_v14 = vpop.f32.mrf.mxu0 }
  0xcb   :  { %v259_v15 = vpop.f32.mrf.mxu1  ;;  %v2838_v38 = vadd.f32 %v2372_v14, %v2807_v16 }
  0xcc   :  { %v142_v17 = vpop.f32.mrf.mxu0 }
  0xcd   :  { %v2392_v19 = vpop.f32.mrf.mxu1  ;;  %v2812_v20 = vadd.f32 %v2807_v16, %v142_v17 }
  0xcf   :  { %v263_v21 = vadd.f32 %v259_v15, %v2812_v20 }
  0xd1   :  { %v264_v22 = vmul.f32 0.5, %v263_v21 }
  0xd3   :  { %v265_v23 = vsel %vm187_vm2, %v263_v21, %v264_v22 }
  0xd4   :  { %2603 = vtanh.f32 %v265_v23 }
  0xd6   :  { %v2375_v0 = vpop.f32.mrf.mxu0 }
  0xd8   :  { %v152_v1 = vpop.f32.mrf.mxu0 }
  0xd9   :  { %v2897_v11 = vadd.f32 %v2807_v16, %v152_v1 }
  0xda   :  { %v2888_v5 = vpop.f32.mrf.mxu0 }
  0xdc   :  { %v2890_v6 = vpop.f32.mrf.mxu0 }
  0xdd   :  { %v2948_v55 = vadd.f32 %v2807_v16, %v2890_v6 }
  0xde   :  { %v2892_v8 = vpop.f32.mrf.mxu0 }
  0xe0   :  { %v2894_v10 = vpop.f32.mrf.mxu0 }
  0xe1   :  { %v2604_v24 = vpop.eup %2603 }
  0xe2   :  { %v267_v25 = vmul.f32 0.5, %v2604_v24 }
  0xe4   :  { %v268_v27 = vadd.f32 0.5, %v267_v25 }
  0xe6   :  { %v269_v28 = vsel %vm187_vm2, %v2604_v24, %v268_v27 }
  0xe7   :  { %v279_v29 = vmul.f32 %v277_v26, %v269_v28  ;;  %271 = vrot.lane.b32.xlu0 %v269_v28, %s2674_s5 }
  0xe9   :  { %281 = vrot.lane.b32.xlu1 %v279_v29, %s2675_s12 }
 0x159   :  { %v272_v30 = vpop.permute.xlu0 %271 }
 0x15a   :  { %v274_v31 = vmul.f32 %v272_v30, %v269_v28 }
 0x15b   :  { %v282_v32 = vpop.permute.xlu1 %281 }
 0x15c   :  { %v284_v33 = vadd.f32 %v282_v32, %v274_v31 }
 0x15e   :  { %2605 = vtanh.f32 %v284_v33 }
 0x16b   :  { %v2606_v34 = vpop.eup %2605 }
 0x16c   :  { %287 = vrot.lane.b32.xlu1 %v2606_v34, %s2673_s11  ;;  %v2922_v34 = vadd.f32 %v2375_v0, %v2807_v16 }
 0x170   :  { %381 = vrot.lane.b32.xlu1 %v284_v33, %s2674_s5 }
 0x1de   :  { %v288_v35 = vpop.permute.xlu1 %287 }
 0x1df   :  { %v290_v36 = vmul.f32 %v288_v35, %v269_v28 }
 0x1e1   :  { %292 = vrot.lane.b32.xlu0 %v290_v36, %s2674_s5 }
 0x1e2   :  { %v382_v47 = vpop.permute.xlu1 %381 }
 0x253   :  { %v293_v37 = vpop.permute.xlu0 %292 }
 0x254   :  { %295 = vst.msk [vmem:[#allocation2] sm:$0xff] %vm51_vm1, %v293_v37  ;;  %2402 = vmatmul.mubr.msk.f32.vlgmr.msra.gmra.mxu1 %vm51_vm1, %v293_v37 }
 0x255   :  { %2416 = vmatpush3.msra.mxu1 %v2736_v3  ;;  %2423 = vmatprep.mubr.msk.f32.mxu1 %vm2672_vm0, %v2671_v2 }
 0x256   :  { %2417 = vmatprep.subr.mxu1 %v2671_v2 }
 0x257   :  { %2418 = vmatpush3.msra.mxu1 %v2744_v4 }
 0x258   :  { %2419 = vmatprep.subr.mxu1 %v2671_v2 }
 0x259   :  { %2420 = vmatpush3.msra.mxu1 %v2757_v7 }
 0x25a   :  { %2421 = vmatprep.subr.mxu1 %v2671_v2 }
 0x25b   :  { %2422 = vmatpush3.msra.mxu1 %v2767_v9 }
 0x25c   :  { %2437 = vmatprep.subr.mxu1 %v2671_v2 }
 0x314   :  { %v364_v39 = vpop.f32.mrf.mxu1 }
 0x315   :  { %v368_v40 = vadd.f32 %v364_v39, %v2838_v38 }
 0x316   :  { %v2403_v41 = vpop.f32.mrf.mxu1 }
 0x317   :  { %v369_v42 = vmul.f32 0.5, %v368_v40 }
 0x319   :  { %v370_v43 = vsel %vm187_vm2, %v368_v40, %v369_v42 }
 0x31a   :  { %2607 = vtanh.f32 %v370_v43 }
 0x327   :  { %v2608_v44 = vpop.eup %2607 }
 0x328   :  { %v372_v45 = vmul.f32 0.5, %v2608_v44 }
 0x32a   :  { %v373_v46 = vadd.f32 0.5, %v372_v45 }
 0x32c   :  { %v374_v48 = vsel %vm187_vm2, %v2608_v44, %v373_v46 }
 0x32d   :  { %376 = vrot.lane.b32.xlu0 %v374_v48, %s2674_s5  ;;  %v384_v49 = vmul.f32 %v382_v47, %v374_v48 }
 0x32f   :  { %386 = vrot.lane.b32.xlu1 %v384_v49, %s2675_s12 }
 0x39f   :  { %v377_v50 = vpop.permute.xlu0 %376 }
 0x3a0   :  { %v379_v51 = vmul.f32 %v377_v50, %v374_v48 }
 0x3a1   :  { %v387_v52 = vpop.permute.xlu1 %386 }
 0x3a2   :  { %v389_v53 = vadd.f32 %v387_v52, %v379_v51 }
 0x3a4   :  { %2609 = vtanh.f32 %v389_v53 }
 0x3b1   :  { %v2610_v60 = vpop.eup %2609 }
 0x3b2   :  { %392 = vrot.lane.b32.xlu0 %v2610_v60, %s2673_s11 }
 0x3b6   :  { %486 = vrot.lane.b32.xlu0 %v389_v53, %s2674_s5 }
 0x424   :  { %v393_v61 = vpop.permute.xlu0 %392 }
 0x425   :  { %v395_v62 = vmul.f32 %v393_v61, %v374_v48 }
 0x427   :  { %397 = vrot.lane.b32.xlu1 %v395_v62, %s2674_s5 }
 0x428   :  { %v487_v23 = vpop.permute.xlu0 %486 }
 0x499   :  { %v398_v63 = vpop.permute.xlu1 %397 }
 0x49a   :  { %400 = vst.msk [vmem:[#allocation2 + $0x8] sm:$0xff] %vm51_vm1, %v398_v63  ;;  %2413 = vmatmul.mubr.msk.f32.vlgmr.msra.gmra.mxu0 %vm51_vm1, %v398_v63 }
 0x49b   :  { %2427 = vmatpush3.msra.mxu0 %v2736_v3  ;;  %2434 = vmatprep.mubr.msk.f32.mxu0 %vm2672_vm0, %v2671_v2 }
 0x49c   :  { %2428 = vmatprep.subr.mxu0 %v2671_v2 }
 0x49d   :  { %2429 = vmatpush3.msra.mxu0 %v2744_v4 }
 0x49e   :  { %2430 = vmatprep.subr.mxu0 %v2671_v2 }
 0x49f   :  { %2431 = vmatpush3.msra.mxu0 %v2757_v7 }
 0x4a0   :  { %2432 = vmatprep.subr.mxu0 %v2671_v2 }
 0x4a1   :  { %2433 = vmatpush3.msra.mxu0 %v2767_v9 }
 0x4a2   :  { %2448 = vmatprep.subr.mxu0 %v2671_v2 }
 0x55a   :  { %v469_v12 = vpop.f32.mrf.mxu0 }
 0x55b   :  { %v473_v13 = vadd.f32 %v469_v12, %v2897_v11 }
 0x55c   :  { %v2414_v14 = vpop.f32.mrf.mxu0 }
 0x55d   :  { %v474_v15 = vmul.f32 0.5, %v473_v13 }
 0x55f   :  { %v475_v17 = vsel %vm187_vm2, %v473_v13, %v474_v15 }
 0x560   :  { %2611 = vtanh.f32 %v475_v17 }
 0x56d   :  { %v2612_v19 = vpop.eup %2611 }
 0x56e   :  { %v477_v21 = vmul.f32 0.5, %v2612_v19 }
 0x570   :  { %v478_v22 = vadd.f32 0.5, %v477_v21 }
 0x572   :  { %v479_v24 = vsel %vm187_vm2, %v2612_v19, %v478_v22 }
 0x573   :  { %481 = vrot.lane.b32.xlu1 %v479_v24, %s2674_s5  ;;  %v489_v25 = vmul.f32 %v487_v23, %v479_v24  ;;  %v2974_v23 = vadd.f32 %v2888_v5, %v2807_v16 }
 0x575   :  { %491 = vrot.lane.b32.xlu0 %v489_v25, %s2675_s12 }
 0x5e5   :  { %v482_v26 = vpop.permute.xlu1 %481 }
 0x5e6   :  { %v484_v27 = vmul.f32 %v482_v26, %v479_v24 }
 0x5e7   :  { %v492_v28 = vpop.permute.xlu0 %491 }
 0x5e8   :  { %v494_v29 = vadd.f32 %v492_v28, %v484_v27 }
 0x5ea   :  { %2613 = vtanh.f32 %v494_v29 }
 0x5f7   :  { %v2614_v30 = vpop.eup %2613 }
 0x5f8   :  { %497 = vrot.lane.b32.xlu1 %v2614_v30, %s2673_s11 }
 0x5fc   :  { %591 = vrot.lane.b32.xlu1 %v494_v29, %s2674_s5 }
 0x66a   :  { %v498_v31 = vpop.permute.xlu1 %497 }
 0x66b   :  { %v500_v32 = vmul.f32 %v498_v31, %v479_v24 }
 0x66d   :  { %502 = vrot.lane.b32.xlu0 %v500_v32, %s2674_s5 }
 0x66e   :  { %v592_v44 = vpop.permute.xlu1 %591 }
 0x6df   :  { %v503_v33 = vpop.permute.xlu0 %502 }
 0x6e0   :  { %505 = vst.msk [vmem:[#allocation2 + $0x10] sm:$0xff] %vm51_vm1, %v503_v33  ;;  %2424 = vmatmul.mubr.msk.f32.vlgmr.msra.gmra.mxu1 %vm51_vm1, %v503_v33 }
 0x6e1   :  { %2438 = vmatpush3.msra.mxu1 %v2736_v3  ;;  %2445 = vmatprep.mubr.msk.f32.mxu1 %vm2672_vm0, %v2671_v2 }
 0x6e2   :  { %2439 = vmatprep.subr.mxu1 %v2671_v2 }
 0x6e3   :  { %2440 = vmatpush3.msra.mxu1 %v2744_v4 }
 0x6e4   :  { %2441 = vmatprep.subr.mxu1 %v2671_v2 }
 0x6e5   :  { %2442 = vmatpush3.msra.mxu1 %v2757_v7 }
 0x6e6   :  { %2443 = vmatprep.subr.mxu1 %v2671_v2 }
 0x6e7   :  { %2444 = vmatpush3.msra.mxu1 %v2767_v9 }
 0x6e8   :  { %2459 = vmatprep.subr.mxu1 %v2671_v2 }
 0x7a0   :  { %v574_v35 = vpop.f32.mrf.mxu1 }
 0x7a1   :  { %v578_v36 = vadd.f32 %v574_v35, %v2922_v34 }
 0x7a2   :  { %v2425_v37 = vpop.f32.mrf.mxu1 }
 0x7a3   :  { %v579_v39 = vmul.f32 0.5, %v578_v36 }
 0x7a5   :  { %v580_v40 = vsel %vm187_vm2, %v578_v36, %v579_v39 }
 0x7a6   :  { %2615 = vtanh.f32 %v580_v40 }
 0x7b3   :  { %v2616_v41 = vpop.eup %2615 }
 0x7b4   :  { %v582_v42 = vmul.f32 0.5, %v2616_v41 }
 0x7b6   :  { %v583_v43 = vadd.f32 0.5, %v582_v42 }
 0x7b8   :  { %v584_v45 = vsel %vm187_vm2, %v2616_v41, %v583_v43 }
 0x7b9   :  { %586 = vrot.lane.b32.xlu0 %v584_v45, %s2674_s5  ;;  %v594_v46 = vmul.f32 %v592_v44, %v584_v45  ;;  %v3000_v44 = vadd.f32 %v2807_v16, %v2894_v10 }
 0x7bb   :  { %596 = vrot.lane.b32.xlu1 %v594_v46, %s2675_s12 }
 0x82b   :  { %v587_v47 = vpop.permute.xlu0 %586 }
 0x82c   :  { %v589_v48 = vmul.f32 %v587_v47, %v584_v45 }
 0x82d   :  { %v597_v49 = vpop.permute.xlu1 %596 }
 0x82e   :  { %v599_v50 = vadd.f32 %v597_v49, %v589_v48 }
 0x830   :  { %2617 = vtanh.f32 %v599_v50 }
 0x83d   :  { %v2618_v51 = vpop.eup %2617 }
 0x83e   :  { %602 = vrot.lane.b32.xlu0 %v2618_v51, %s2673_s11 }
 0x842   :  { %696 = vrot.lane.b32.xlu0 %v599_v50, %s2674_s5 }
 0x8b0   :  { %v603_v52 = vpop.permute.xlu0 %602 }
 0x8b1   :  { %v605_v53 = vmul.f32 %v603_v52, %v584_v45 }
 0x8b3   :  { %607 = vrot.lane.b32.xlu1 %v605_v53, %s2674_s5 }
 0x8b4   :  { %v697_v0 = vpop.permute.xlu0 %696 }
 0x925   :  { %v608_v54 = vpop.permute.xlu1 %607 }
 0x926   :  { %610 = vst.msk [vmem:[#allocation2 + $0x18] sm:$0xff] %vm51_vm1, %v608_v54  ;;  %2435 = vmatmul.mubr.msk.f32.vlgmr.msra.gmra.mxu0 %vm51_vm1, %v608_v54 }
 0x927   :  { %2449 = vmatpush3.msra.mxu0 %v2736_v3  ;;  %2456 = vmatprep.mubr.msk.f32.mxu0 %vm2672_vm0, %v2671_v2 }
 0x928   :  { %2450 = vmatprep.subr.mxu0 %v2671_v2 }
 0x929   :  { %2451 = vmatpush3.msra.mxu0 %v2744_v4 }
 0x92a   :  { %2452 = vmatprep.subr.mxu0 %v2671_v2 }
 0x92b   :  { %2453 = vmatpush3.msra.mxu0 %v2757_v7 }
 0x92c   :  { %2454 = vmatprep.subr.mxu0 %v2671_v2 }
 0x92d   :  { %2455 = vmatpush3.msra.mxu0 %v2767_v9 }
 0x92e   :  { %2470 = vmatprep.subr.mxu0 %v2671_v2 }
 0x9e6   :  { %v679_v56 = vpop.f32.mrf.mxu0 }
 0x9e7   :  { %v683_v57 = vadd.f32 %v679_v56, %v2948_v55 }
 0x9e8   :  { %v2436_v58 = vpop.f32.mrf.mxu0 }
 0x9e9   :  { %v684_v59 = vmul.f32 0.5, %v683_v57 }
 0x9eb   :  { %v685_v60 = vsel %vm187_vm2, %v683_v57, %v684_v59 }
 0x9ec   :  { %2619 = vtanh.f32 %v685_v60 }
 0x9f9   :  { %v2620_v61 = vpop.eup %2619 }
 0x9fa   :  { %v687_v62 = vmul.f32 0.5, %v2620_v61 }
 0x9fc   :  { %v688_v63 = vadd.f32 0.5, %v687_v62 }
 0x9fe   :  { %v689_v1 = vsel %vm187_vm2, %v2620_v61, %v688_v63 }
 0x9ff   :  { %691 = vrot.lane.b32.xlu1 %v689_v1, %s2674_s5  ;;  %v699_v6 = vmul.f32 %v697_v0, %v689_v1  ;;  %v178_v0 = vadd.f32 %v2892_v8, %v2807_v16 }
 0xa01   :  { %701 = vrot.lane.b32.xlu0 %v699_v6, %s2675_s12 }
 0xa71   :  { %v692_v12 = vpop.permute.xlu1 %691 }
 0xa72   :  { %v694_v13 = vmul.f32 %v692_v12, %v689_v1 }
 0xa73   :  { %v702_v14 = vpop.permute.xlu0 %701 }
 0xa74   :  { %v704_v15 = vadd.f32 %v702_v14, %v694_v13 }
 0xa76   :  { %2621 = vtanh.f32 %v704_v15 }
 0xa83   :  { %v2622_v17 = vpop.eup %2621 }
 0xa84   :  { %707 = vrot.lane.b32.xlu1 %v2622_v17, %s2673_s11 }
 0xa88   :  { %801 = vrot.lane.b32.xlu1 %v704_v15, %s2674_s5 }
 0xaf6   :  { %v708_v19 = vpop.permute.xlu1 %707 }
 0xaf7   :  { %v710_v21 = vmul.f32 %v708_v19, %v689_v1 }
 0xaf9   :  { %712 = vrot.lane.b32.xlu0 %v710_v21, %s2674_s5 }
 0xafa   :  { %v802_v32 = vpop.permute.xlu1 %801 }
 0xb6b   :  { %v713_v22 = vpop.permute.xlu0 %712 }
 0xb6c   :  { %715 = vst.msk [vmem:[#allocation2 + $0x20] sm:$0xff] %vm51_vm1, %v713_v22  ;;  %2446 = vmatmul.mubr.msk.f32.vlgmr.msra.gmra.mxu1 %vm51_vm1, %v713_v22 }
 0xb6d   :  { %2460 = vmatpush3.msra.mxu1 %v2736_v3  ;;  %2467 = vmatprep.mubr.msk.f32.mxu1 %vm2672_vm0, %v2671_v2 }
 0xb6e   :  { %2461 = vmatprep.subr.mxu1 %v2671_v2 }
 0xb6f   :  { %2462 = vmatpush3.msra.mxu1 %v2744_v4 }
 0xb70   :  { %2463 = vmatprep.subr.mxu1 %v2671_v2 }
 0xb71   :  { %2464 = vmatpush3.msra.mxu1 %v2757_v7 }
 0xb72   :  { %2465 = vmatprep.subr.mxu1 %v2671_v2 }
 0xb73   :  { %2466 = vmatpush3.msra.mxu1 %v2767_v9 }
 0xb74   :  { %2481 = vmatprep.subr.mxu1 %v2671_v2 }
 0xc2c   :  { %v784_v24 = vpop.f32.mrf.mxu1 }
 0xc2d   :  { %v788_v25 = vadd.f32 %v784_v24, %v2974_v23 }
 0xc2e   :  { %v2447_v26 = vpop.f32.mrf.mxu1 }
 0xc2f   :  { %v789_v27 = vmul.f32 0.5, %v788_v25 }
 0xc31   :  { %v790_v28 = vsel %vm187_vm2, %v788_v25, %v789_v27 }
 0xc32   :  { %2623 = vtanh.f32 %v790_v28 }
 0xc3f   :  { %v2624_v29 = vpop.eup %2623 }
 0xc40   :  { %v792_v30 = vmul.f32 0.5, %v2624_v29 }
 0xc42   :  { %v793_v31 = vadd.f32 0.5, %v792_v30 }
 0xc44   :  { %v794_v33 = vsel %vm187_vm2, %v2624_v29, %v793_v31 }
 0xc45   :  { %796 = vrot.lane.b32.xlu0 %v794_v33, %s2674_s5  ;;  %v804_v5 = vmul.f32 %v802_v32, %v794_v33 }
 0xc47   :  { %806 = vrot.lane.b32.xlu1 %v804_v5, %s2675_s12 }
 0xcb7   :  { %v797_v35 = vpop.permute.xlu0 %796 }
 0xcb8   :  { %v799_v36 = vmul.f32 %v797_v35, %v794_v33 }
 0xcb9   :  { %v807_v37 = vpop.permute.xlu1 %806 }
 0xcba   :  { %v809_v39 = vadd.f32 %v807_v37, %v799_v36 }
 0xcbc   :  { %2625 = vtanh.f32 %v809_v39 }
 0xcc9   :  { %v2626_v40 = vpop.eup %2625 }
 0xcca   :  { %812 = vrot.lane.b32.xlu0 %v2626_v40, %s2673_s11 }
 0xcce   :  { %906 = vrot.lane.b32.xlu0 %v809_v39, %s2674_s5 }
 0xd3c   :  { %v813_v41 = vpop.permute.xlu0 %812 }
 0xd3d   :  { %v815_v42 = vmul.f32 %v813_v41, %v794_v33 }
 0xd3f   :  { %817 = vrot.lane.b32.xlu1 %v815_v42, %s2674_s5 }
 0xd40   :  { %v907_v53 = vpop.permute.xlu0 %906 }
 0xdb1   :  { %v818_v43 = vpop.permute.xlu1 %817 }
 0xdb2   :  { %820 = vst.msk [vmem:[#allocation2 + $0x28] sm:$0xff] %vm51_vm1, %v818_v43  ;;  %2457 = vmatmul.mubr.msk.f32.vlgmr.msra.gmra.mxu0 %vm51_vm1, %v818_v43 }
 0xdb3   :  { %2471 = vmatpush3.msra.mxu0 %v2736_v3  ;;  %2478 = vmatprep.mubr.msk.f32.mxu0 %vm2672_vm0, %v2671_v2 }
 0xdb4   :  { %2472 = vmatprep.subr.mxu0 %v2671_v2 }
 0xdb5   :  { %2473 = vmatpush3.msra.mxu0 %v2744_v4 }
 0xdb6   :  { %2474 = vmatprep.subr.mxu0 %v2671_v2 }
 0xdb7   :  { %2475 = vmatpush3.msra.mxu0 %v2757_v7 }
 0xdb8   :  { %2476 = vmatprep.subr.mxu0 %v2671_v2 }
 0xdb9   :  { %2477 = vmatpush3.msra.mxu0 %v2767_v9 }
 0xdba   :  { %2492 = vmatprep.subr.mxu0 %v2671_v2 }
 0xe72   :  { %v889_v45 = vpop.f32.mrf.mxu0 }
 0xe73   :  { %v893_v46 = vadd.f32 %v889_v45, %v3000_v44 }
 0xe74   :  { %v2458_v47 = vpop.f32.mrf.mxu0 }
 0xe75   :  { %v894_v48 = vmul.f32 0.5, %v893_v46 }
 0xe77   :  { %v895_v49 = vsel %vm187_vm2, %v893_v46, %v894_v48 }
 0xe78   :  { %2627 = vtanh.f32 %v895_v49 }
 0xe85   :  { %v2628_v50 = vpop.eup %2627 }
 0xe86   :  { %v897_v51 = vmul.f32 0.5, %v2628_v50 }
 0xe88   :  { %v898_v52 = vadd.f32 0.5, %v897_v51 }
 0xe8a   :  { %v899_v54 = vsel %vm187_vm2, %v2628_v50, %v898_v52 }
 0xe8b   :  { %901 = vrot.lane.b32.xlu1 %v899_v54, %s2674_s5  ;;  %v909_v10 = vmul.f32 %v907_v53, %v899_v54 }
 0xe8d   :  { %911 = vrot.lane.b32.xlu0 %v909_v10, %s2675_s12 }
 0xefd   :  { %v902_v56 = vpop.permute.xlu1 %901 }
 0xefe   :  { %v904_v57 = vmul.f32 %v902_v56, %v899_v54 }
 0xeff   :  { %v912_v58 = vpop.permute.xlu0 %911 }
 0xf00   :  { %v914_v59 = vadd.f32 %v912_v58, %v904_v57 }
 0xf02   :  { %2629 = vtanh.f32 %v914_v59 }
 0xf0f   :  { %v2630_v60 = vpop.eup %2629 }
 0xf10   :  { %917 = vrot.lane.b32.xlu1 %v2630_v60, %s2673_s11 }
 0xf14   :  { %1011 = vrot.lane.b32.xlu1 %v914_v59, %s2674_s5 }
 0xf82   :  { %v918_v61 = vpop.permute.xlu1 %917 }
 0xf83   :  { %v920_v62 = vmul.f32 %v918_v61, %v899_v54 }
 0xf85   :  { %922 = vrot.lane.b32.xlu0 %v920_v62, %s2674_s5 }
 0xf86   :  { %v1012_v21 = vpop.permute.xlu1 %1011 }
 0xff7   :  { %v923_v63 = vpop.permute.xlu0 %922 }
 0xff8   :  { %925 = vst.msk [vmem:[#allocation2 + $0x30] sm:$0xff] %vm51_vm1, %v923_v63  ;;  %2468 = vmatmul.mubr.msk.f32.vlgmr.msra.gmra.mxu1 %vm51_vm1, %v923_v63 }
 0xff9   :  { %2482 = vmatpush3.msra.mxu1 %v2736_v3  ;;  %2489 = vmatprep.mubr.msk.f32.mxu1 %vm2672_vm0, %v2671_v2 }
 0xffa   :  { %2483 = vmatprep.subr.mxu1 %v2671_v2 }
 0xffb   :  { %2484 = vmatpush3.msra.mxu1 %v2744_v4 }
 0xffc   :  { %2485 = vmatprep.subr.mxu1 %v2671_v2 }
 0xffd   :  { %2486 = vmatpush3.msra.mxu1 %v2757_v7 }
 0xffe   :  { %2487 = vmatprep.subr.mxu1 %v2671_v2 }
 0xfff   :  { %2488 = vmatpush3.msra.mxu1 %v2767_v9 }
0x1000   :  { %2503 = vmatprep.subr.mxu1 %v2671_v2 }
0x10b8   :  { %v994_v1 = vpop.f32.mrf.mxu1 }
0x10b9   :  { %v998_v6 = vadd.f32 %v994_v1, %v178_v0 }
0x10ba   :  { %v2469_v12 = vpop.f32.mrf.mxu1 }
0x10bb   :  { %v999_v13 = vmul.f32 0.5, %v998_v6 }
0x10bd   :  { %v1000_v14 = vsel %vm187_vm2, %v998_v6, %v999_v13 }
0x10be   :  { %2631 = vtanh.f32 %v1000_v14 }
0x10cb   :  { %v2632_v15 = vpop.eup %2631 }
0x10cc   :  { %v1002_v17 = vmul.f32 0.5, %v2632_v15 }
0x10ce   :  { %v1003_v19 = vadd.f32 0.5, %v1002_v17 }
0x10d0   :  { %v1004_v22 = vsel %vm187_vm2, %v2632_v15, %v1003_v19 }
0x10d1   :  { %1006 = vrot.lane.b32.xlu0 %v1004_v22, %s2674_s5  ;;  %v1014_v24 = vmul.f32 %v1012_v21, %v1004_v22 }
0x10d3   :  { %1016 = vrot.lane.b32.xlu1 %v1014_v24, %s2675_s12 }
0x1143   :  { %v1007_v16 = vpop.permute.xlu0 %1006 }
0x1144   :  { %v1009_v8 = vmul.f32 %v1007_v16, %v1004_v22 }
0x1145   :  { %v1017_v25 = vpop.permute.xlu1 %1016 }
0x1146   :  { %v1019_v26 = vadd.f32 %v1017_v25, %v1009_v8 }
0x1148   :  { %2633 = vtanh.f32 %v1019_v26 }
0x1155   :  { %v2634_v27 = vpop.eup %2633 }
0x1156   :  { %1022 = vrot.lane.b32.xlu0 %v2634_v27, %s2673_s11 }
0x115a   :  { %1116 = vrot.lane.b32.xlu0 %v1019_v26, %s2674_s5 }
0x11c8   :  { %v1023_v28 = vpop.permute.xlu0 %1022 }
0x11c9   :  { %v1025_v29 = vmul.f32 %v1023_v28, %v1004_v22 }
0x11cb   :  { %1027 = vrot.lane.b32.xlu1 %v1025_v29, %s2674_s5 }
0x11cc   :  { %v1117_v40 = vpop.permute.xlu0 %1116 }
0x123d   :  { %v1028_v30 = vpop.permute.xlu1 %1027 }
0x123e   :  { %1030 = vst.msk [vmem:[#allocation2 + $0x38] sm:$0xff] %vm51_vm1, %v1028_v30  ;;  %2479 = vmatmul.mubr.msk.f32.vlgmr.msra.gmra.mxu0 %vm51_vm1, %v1028_v30 }
0x123f   :  { %2493 = vmatpush3.msra.mxu0 %v2736_v3  ;;  %2500 = vmatprep.mubr.msk.f32.mxu0 %vm2672_vm0, %v2671_v2 }
0x1240   :  { %2494 = vmatprep.subr.mxu0 %v2671_v2 }
0x1241   :  { %2495 = vmatpush3.msra.mxu0 %v2744_v4 }
0x1242   :  { %2496 = vmatprep.subr.mxu0 %v2671_v2 }
0x1243   :  { %2497 = vmatpush3.msra.mxu0 %v2757_v7 }
0x1244   :  { %2498 = vmatprep.subr.mxu0 %v2671_v2 }
0x1245   :  { %2499 = vmatpush3.msra.mxu0 %v2767_v9 }
0x1246   :  { %2514 = vmatprep.subr.mxu0 %v2671_v2 }
0x12fe   :  { %v1099_v31 = vpop.f32.mrf.mxu0 }
0x12ff   :  { %v1103_v32 = vadd.f32 %v1099_v31, %v178_v0 }
0x1300   :  { %v2480_v33 = vpop.f32.mrf.mxu0 }
0x1301   :  { %v1104_v5 = vmul.f32 0.5, %v1103_v32 }
0x1303   :  { %v1105_v35 = vsel %vm187_vm2, %v1103_v32, %v1104_v5 }
0x1304   :  { %2635 = vtanh.f32 %v1105_v35 }
0x1311   :  { %v2636_v36 = vpop.eup %2635 }
0x1312   :  { %v1107_v37 = vmul.f32 0.5, %v2636_v36 }
0x1314   :  { %v1108_v39 = vadd.f32 0.5, %v1107_v37 }
0x1316   :  { %v1109_v41 = vsel %vm187_vm2, %v2636_v36, %v1108_v39 }
0x1317   :  { %1111 = vrot.lane.b32.xlu1 %v1109_v41, %s2674_s5  ;;  %v1119_v42 = vmul.f32 %v1117_v40, %v1109_v41 }
0x1319   :  { %1121 = vrot.lane.b32.xlu0 %v1119_v42, %s2675_s12 }
0x1389   :  { %v1112_v43 = vpop.permute.xlu1 %1111 }
0x138a   :  { %v1114_v45 = vmul.f32 %v1112_v43, %v1109_v41 }
0x138b   :  { %v1122_v46 = vpop.permute.xlu0 %1121 }
0x138c   :  { %v1124_v47 = vadd.f32 %v1122_v46, %v1114_v45 }
0x138e   :  { %2637 = vtanh.f32 %v1124_v47 }
0x139b   :  { %v2638_v48 = vpop.eup %2637 }
0x139c   :  { %1127 = vrot.lane.b32.xlu1 %v2638_v48, %s2673_s11 }
0x13a0   :  { %1221 = vrot.lane.b32.xlu1 %v1124_v47, %s2674_s5 }
0x140e   :  { %v1128_v49 = vpop.permute.xlu1 %1127 }
0x140f   :  { %v1130_v50 = vmul.f32 %v1128_v49, %v1109_v41 }
0x1411   :  { %1132 = vrot.lane.b32.xlu0 %v1130_v50, %s2674_s5 }
0x1412   :  { %v1222_v60 = vpop.permute.xlu1 %1221 }
0x1483   :  { %v1133_v51 = vpop.permute.xlu0 %1132 }
0x1484   :  { %1135 = vst.msk [vmem:[#allocation3] sm:$0xff] %vm51_vm1, %v1133_v51  ;;  %2490 = vmatmul.mubr.msk.f32.vlgmr.msra.gmra.mxu1 %vm51_vm1, %v1133_v51 }
0x1485   :  { %2504 = vmatpush3.msra.mxu1 %v2736_v3  ;;  %2511 = vmatprep.mubr.msk.f32.mxu1 %vm2672_vm0, %v2671_v2 }
0x1486   :  { %2505 = vmatprep.subr.mxu1 %v2671_v2 }
0x1487   :  { %2506 = vmatpush3.msra.mxu1 %v2744_v4 }
0x1488   :  { %2507 = vmatprep.subr.mxu1 %v2671_v2 }
0x1489   :  { %2508 = vmatpush3.msra.mxu1 %v2757_v7 }
0x148a   :  { %2509 = vmatprep.subr.mxu1 %v2671_v2 }
0x148b   :  { %2510 = vmatpush3.msra.mxu1 %v2767_v9 }
0x148c   :  { %2525 = vmatprep.subr.mxu1 %v2671_v2 }
0x1544   :  { %v1204_v52 = vpop.f32.mrf.mxu1 }
0x1545   :  { %v1208_v53 = vadd.f32 %v1204_v52, %v3000_v44  ;;  %v2667_v52 = vld [vmem:[%s3279_s4 + $0x18] sm:$0xff] }
0x1546   :  { %v2491_v54 = vpop.f32.mrf.mxu1 }
0x1547   :  { %v1209_v10 = vmul.f32 0.5, %v1208_v53  ;;  %v2669_v54 = vld [vmem:[%s3279_s4 + $0x8] sm:$0xff] }
0x1549   :  { %v1210_v56 = vsel %vm187_vm2, %v1208_v53, %v1209_v10  ;;  %v2668_v53 = vld [vmem:[%s3279_s4 + $0x10] sm:$0xff] }
0x154a   :  { %2639 = vtanh.f32 %v1210_v56 }
0x1557   :  { %v2640_v57 = vpop.eup %2639 }
0x1558   :  { %v1212_v58 = vmul.f32 0.5, %v2640_v57 }
0x155a   :  { %v1213_v59 = vadd.f32 0.5, %v1212_v58 }
0x155c   :  { %v1214_v61 = vsel %vm187_vm2, %v2640_v57, %v1213_v59 }
0x155d   :  { %1216 = vrot.lane.b32.xlu0 %v1214_v61, %s2674_s5  ;;  %v1224_v62 = vmul.f32 %v1222_v60, %v1214_v61 }
0x155f   :  { %1226 = vrot.lane.b32.xlu1 %v1224_v62, %s2675_s12 }
0x15cf   :  { %v1217_v63 = vpop.permute.xlu0 %1216 }
0x15d0   :  { %v1219_v44 = vmul.f32 %v1217_v63, %v1214_v61 }
0x15d1   :  { %v1227_v0 = vpop.permute.xlu1 %1226 }
0x15d2   :  { %v1229_v1 = vadd.f32 %v1227_v0, %v1219_v44 }
0x15d4   :  { %2641 = vtanh.f32 %v1229_v1 }
0x15e1   :  { %v2642_v6 = vpop.eup %2641 }
0x15e2   :  { %1232 = vrot.lane.b32.xlu0 %v2642_v6, %s2673_s11 }
0x15e6   :  { %1326 = vrot.lane.b32.xlu0 %v1229_v1, %s2674_s5 }
0x1654   :  { %v1233_v12 = vpop.permute.xlu0 %1232 }
0x1655   :  { %v1235_v13 = vmul.f32 %v1233_v12, %v1214_v61 }
0x1657   :  { %1237 = vrot.lane.b32.xlu1 %v1235_v13, %s2674_s5 }
0x1658   :  { %v1327_v25 = vpop.permute.xlu0 %1326 }
0x16c9   :  { %v1238_v14 = vpop.permute.xlu1 %1237 }
0x16ca   :  { %1240 = vst.msk [vmem:[#allocation3 + $0x8] sm:$0xff] %vm51_vm1, %v1238_v14  ;;  %2501 = vmatmul.mubr.msk.f32.vlgmr.msra.gmra.mxu0 %vm51_vm1, %v1238_v14 }
0x16cb   :  { %2515 = vmatpush3.msra.mxu0 %v2736_v3  ;;  %2522 = vmatprep.mubr.msk.f32.mxu0 %vm2672_vm0, %v2671_v2 }
0x16cc   :  { %2516 = vmatprep.subr.mxu0 %v2671_v2 }
0x16cd   :  { %2517 = vmatpush3.msra.mxu0 %v2744_v4 }
0x16ce   :  { %2518 = vmatprep.subr.mxu0 %v2671_v2 }
0x16cf   :  { %2519 = vmatpush3.msra.mxu0 %v2757_v7 }
0x16d0   :  { %2520 = vmatprep.subr.mxu0 %v2671_v2 }
0x16d1   :  { %2521 = vmatpush3.msra.mxu0 %v2767_v9 }
0x16d2   :  { %2536 = vmatprep.subr.mxu0 %v2671_v2 }
0x178a   :  { %v1309_v15 = vpop.f32.mrf.mxu0 }
0x178b   :  { %v1313_v17 = vadd.f32 %v1309_v15, %v2974_v23 }
0x178c   :  { %v2502_v19 = vpop.f32.mrf.mxu0 }
0x178d   :  { %v1314_v21 = vmul.f32 0.5, %v1313_v17 }
0x178f   :  { %v1315_v22 = vsel %vm187_vm2, %v1313_v17, %v1314_v21  ;;  %v2670_v17 = vld [vmem:[%s3279_s4] sm:$0xff] }
0x1790   :  { %2643 = vtanh.f32 %v1315_v22 }
0x179d   :  { %v2644_v24 = vpop.eup %2643 }
0x179e   :  { %v1317_v16 = vmul.f32 0.5, %v2644_v24 }
0x17a0   :  { %v1318_v8 = vadd.f32 0.5, %v1317_v16 }
0x17a2   :  { %v1319_v26 = vsel %vm187_vm2, %v2644_v24, %v1318_v8 }
0x17a3   :  { %1321 = vrot.lane.b32.xlu1 %v1319_v26, %s2674_s5  ;;  %v1329_v27 = vmul.f32 %v1327_v25, %v1319_v26 }
0x17a5   :  { %1331 = vrot.lane.b32.xlu0 %v1329_v27, %s2675_s12 }
0x1815   :  { %v1322_v28 = vpop.permute.xlu1 %1321 }
0x1816   :  { %v1324_v23 = vmul.f32 %v1322_v28, %v1319_v26 }
0x1817   :  { %v1332_v29 = vpop.permute.xlu0 %1331 }
0x1818   :  { %v1334_v30 = vadd.f32 %v1332_v29, %v1324_v23 }
0x181a   :  { %2645 = vtanh.f32 %v1334_v30 }
0x1827   :  { %v2646_v31 = vpop.eup %2645 }
0x1828   :  { %1337 = vrot.lane.b32.xlu1 %v2646_v31, %s2673_s11  ;;  %v1894_v31 = vld [vmem:[%s3284_s7 + $0x18] sm:$0xff] }
0x182c   :  { %1431 = vrot.lane.b32.xlu1 %v1334_v30, %s2674_s5 }
0x189a   :  { %v1338_v32 = vpop.permute.xlu1 %1337 }
0x189b   :  { %v1340_v33 = vmul.f32 %v1338_v32, %v1319_v26 }
0x189d   :  { %1342 = vrot.lane.b32.xlu0 %v1340_v33, %s2674_s5 }
0x189e   :  { %v1432_v42 = vpop.permute.xlu1 %1431 }
0x190f   :  { %v1343_v5 = vpop.permute.xlu0 %1342 }
0x1910   :  { %1345 = vst.msk [vmem:[#allocation3 + $0x10] sm:$0xff] %vm51_vm1, %v1343_v5  ;;  %2512 = vmatmul.mubr.msk.f32.vlgmr.msra.gmra.mxu1 %vm51_vm1, %v1343_v5 }
0x1911   :  { %2526 = vmatpush3.msra.mxu1 %v2736_v3  ;;  %2533 = vmatprep.mubr.msk.f32.mxu1 %vm2672_vm0, %v2671_v2 }
0x1912   :  { %2527 = vmatprep.subr.mxu1 %v2671_v2 }
0x1913   :  { %2528 = vmatpush3.msra.mxu1 %v2744_v4 }
0x1914   :  { %2529 = vmatprep.subr.mxu1 %v2671_v2 }
0x1915   :  { %2530 = vmatpush3.msra.mxu1 %v2757_v7 }
0x1916   :  { %2531 = vmatprep.subr.mxu1 %v2671_v2 }
0x1917   :  { %2532 = vmatpush3.msra.mxu1 %v2767_v9 }
0x1918   :  { %2547 = vmatprep.subr.mxu1 %v2671_v2 }
0x19d0   :  { %v1414_v35 = vpop.f32.mrf.mxu1 }
0x19d1   :  { %v1418_v3 = vadd.f32 %v1414_v35, %v2948_v55 }
0x19d2   :  { %v2513_v36 = vpop.f32.mrf.mxu1 }
0x19d3   :  { %v1419_v37 = vmul.f32 0.5, %v1418_v3  ;;  %v1883_v36 = vld [vmem:[#allocation3] sm:$0xff] }
0x19d5   :  { %v1420_v39 = vsel %vm187_vm2, %v1418_v3, %v1419_v37  ;;  %v1893_v3 = vld [vmem:[%s3284_s7 + $0x10] sm:$0xff]  ;;  %v1892_v37 = vld [vmem:[%s3284_s7 + $0x8] sm:$0xff] }
0x19d6   :  { %2647 = vtanh.f32 %v1420_v39  ;;  %v1891_v39 = vld [vmem:[%s3284_s7] sm:$0xff] }
0x19e3   :  { %v2648_v4 = vpop.eup %2647 }
0x19e4   :  { %v1422_v40 = vmul.f32 0.5, %v2648_v4 }
0x19e6   :  { %v1423_v41 = vadd.f32 0.5, %v1422_v40  ;;  %v1885_v40 = vld [vmem:[#allocation3 + $0x10] sm:$0xff] }
0x19e8   :  { %v1424_v7 = vsel %vm187_vm2, %v2648_v4, %v1423_v41  ;;  %v1884_v4 = vld [vmem:[#allocation3 + $0x8] sm:$0xff] }
0x19e9   :  { %1426 = vrot.lane.b32.xlu0 %v1424_v7, %s2674_s5  ;;  %v1434_v43 = vmul.f32 %v1432_v42, %v1424_v7 }
0x19eb   :  { %1436 = vrot.lane.b32.xlu1 %v1434_v43, %s2675_s12 }
0x1a5b   :  { %v1427_v45 = vpop.permute.xlu0 %1426 }
0x1a5c   :  { %v1429_v55 = vmul.f32 %v1427_v45, %v1424_v7 }
0x1a5d   :  { %v1437_v46 = vpop.permute.xlu1 %1436 }
0x1a5e   :  { %v1439_v47 = vadd.f32 %v1437_v46, %v1429_v55 }
0x1a60   :  { %2649 = vtanh.f32 %v1439_v47 }
0x1a6d   :  { %v2650_v48 = vpop.eup %2649 }
0x1a6e   :  { %1442 = vrot.lane.b32.xlu0 %v2650_v48, %s2673_s11 }
0x1a72   :  { %1536 = vrot.lane.b32.xlu0 %v1439_v47, %s2674_s5 }
0x1ae0   :  { %v1443_v49 = vpop.permute.xlu0 %1442 }
0x1ae1   :  { %v1445_v50 = vmul.f32 %v1443_v49, %v1424_v7 }
0x1ae3   :  { %1447 = vrot.lane.b32.xlu1 %v1445_v50, %s2674_s5 }
0x1ae4   :  { %v1537_v63 = vpop.permute.xlu0 %1536 }
0x1b55   :  { %v1448_v51 = vpop.permute.xlu1 %1447 }
0x1b56   :  { %1450 = vst.msk [vmem:[#allocation3 + $0x18] sm:$0xff] %vm51_vm1, %v1448_v51  ;;  %2523 = vmatmul.mubr.msk.f32.vlgmr.msra.gmra.mxu0 %vm51_vm1, %v1448_v51 }
0x1b57   :  { %2537 = vmatpush3.msra.mxu0 %v2667_v52  ;;  %2544 = vmatprep.mubr.msk.f32.mxu0 %vm2672_vm0, %v2671_v2 }
0x1b58   :  { %2538 = vmatprep.subr.mxu0 %v2671_v2 }
0x1b59   :  { %2539 = vmatpush3.msra.mxu0 %v2668_v53 }
0x1b5a   :  { %2540 = vmatprep.subr.mxu0 %v2671_v2 }
0x1b5b   :  { %2541 = vmatpush3.msra.mxu0 %v2669_v54 }
0x1b5c   :  { %2542 = vmatprep.subr.mxu0 %v2671_v2 }
0x1b5d   :  { %2543 = vmatpush3.msra.mxu0 %v2767_v9  ;;  %v1886_v41 = vld [vmem:[#allocation3 + $0x18] sm:$0xff] }
0x1b5e   :  { %2558 = vmatprep.subr.mxu0 %v1894_v31 }
0x1c16   :  { %v1519_v10 = vpop.f32.mrf.mxu0 }
0x1c17   :  { %v1523_v56 = vadd.f32 %v1519_v10, %v2922_v34 }
0x1c18   :  { %v2524_v57 = vpop.f32.mrf.mxu0 }
0x1c19   :  { %v1524_v58 = vmul.f32 0.5, %v1523_v56  ;;  %v1882_v57 = vld [vmem:[%s3285_s6 + $0x18] sm:$0xff] }
0x1c1b   :  { %v1525_v59 = vsel %vm187_vm2, %v1523_v56, %v1524_v58 }
0x1c1c   :  { %2651 = vtanh.f32 %v1525_v59 }
0x1c29   :  { %v2652_v60 = vpop.eup %2651 }
0x1c2a   :  { %v1527_v61 = vmul.f32 0.5, %v2652_v60 }
0x1c2c   :  { %v1528_v62 = vadd.f32 0.5, %v1527_v61 }
0x1c2e   :  { %v1529_v44 = vsel %vm187_vm2, %v2652_v60, %v1528_v62  ;;  %v1881_v62 = vld [vmem:[%s3285_s6 + $0x10] sm:$0xff] }
0x1c2f   :  { %1531 = vrot.lane.b32.xlu1 %v1529_v44, %s2674_s5  ;;  %v1539_v0 = vmul.f32 %v1537_v63, %v1529_v44  ;;  %v1871_v63 = vld [vmem:[#allocation2] sm:$0xff] }
0x1c31   :  { %1541 = vrot.lane.b32.xlu0 %v1539_v0, %s2675_s12  ;;  %v1879_v0 = vld [vmem:[%s3285_s6] sm:$0xff] }
0x1ca1   :  { %v1532_v9 = vpop.permute.xlu1 %1531 }
0x1ca2   :  { %v1534_v34 = vmul.f32 %v1532_v9, %v1529_v44  ;;  %v1872_v9 = vld [vmem:[#allocation2 + $0x8] sm:$0xff] }
0x1ca3   :  { %v1542_v1 = vpop.permute.xlu0 %1541 }
0x1ca4   :  { %v1544_v6 = vadd.f32 %v1542_v1, %v1534_v34  ;;  %v1873_v1 = vld [vmem:[#allocation2 + $0x10] sm:$0xff] }
0x1ca6   :  { %2653 = vtanh.f32 %v1544_v6 }
0x1cb3   :  { %v2654_v12 = vpop.eup %2653 }
0x1cb4   :  { %1547 = vrot.lane.b32.xlu1 %v2654_v12, %s2673_s11  ;;  %v1875_v12 = vld [vmem:[#allocation2 + $0x20] sm:$0xff] }
0x1cb8   :  { %1641 = vrot.lane.b32.xlu1 %v1544_v6, %s2674_s5  ;;  %v1874_v6 = vld [vmem:[#allocation2 + $0x18] sm:$0xff] }
0x1d26   :  { %v1548_v13 = vpop.permute.xlu1 %1547 }
0x1d27   :  { %v1550_v14 = vmul.f32 %v1548_v13, %v1529_v44  ;;  %v1880_v44 = vld [vmem:[%s3285_s6 + $0x8] sm:$0xff] }
0x1d28   :  { %v1876_v13 = vld [vmem:[#allocation2 + $0x28] sm:$0xff] }
0x1d29   :  { %1552 = vrot.lane.b32.xlu0 %v1550_v14, %s2674_s5  ;;  %v1877_v14 = vld [vmem:[#allocation2 + $0x30] sm:$0xff] }
0x1d2a   :  { %v1642_v27 = vpop.permute.xlu1 %1641 }
0x1d9b   :  { %v1553_v15 = vpop.permute.xlu0 %1552 }
0x1d9c   :  { %1555 = vst.msk [vmem:[#allocation3 + $0x20] sm:$0xff] %vm51_vm1, %v1553_v15  ;;  %2534 = vmatmul.mubr.msk.f32.vlgmr.msra.gmra.mxu1 %vm51_vm1, %v1553_v15  ;;  %v1878_v15 = vld [vmem:[#allocation2 + $0x38] sm:$0xff] }
0x1d9d   :  { %2548 = vmatpush3.msra.mxu1 %v2667_v52  ;;  %2555 = vmatprep.mubr.msk.f32.mxu1 %vm2672_vm0, %v2671_v2 }
0x1d9e   :  { %2549 = vmatprep.subr.mxu1 %v2671_v2 }
0x1d9f   :  { %2550 = vmatpush3.msra.mxu1 %v2668_v53 }
0x1da0   :  { %2551 = vmatprep.subr.mxu1 %v2671_v2 }
0x1da1   :  { %2552 = vmatpush3.msra.mxu1 %v2669_v54 }
0x1da2   :  { %2553 = vmatprep.subr.mxu1 %v2671_v2 }
0x1da3   :  { %2554 = vmatpush3.msra.mxu1 %v2670_v17  ;;  %v1887_v42 = vld [vmem:[#allocation3 + $0x20] sm:$0xff] }
0x1da4   :  { %2578 = vmatprep.subr.mxu1 %v1882_v57 }
0x1e5c   :  { %v1624_v19 = vpop.f32.mrf.mxu1 }
0x1e5d   :  { %v1628_v21 = vadd.f32 %v1624_v19, %v2897_v11 }
0x1e5e   :  { %v2535_v22 = vpop.f32.mrf.mxu1 }
0x1e5f   :  { %v1629_v24 = vmul.f32 0.5, %v1628_v21 }
0x1e61   :  { %v1630_v16 = vsel %vm187_vm2, %v1628_v21, %v1629_v24 }
0x1e62   :  { %2655 = vtanh.f32 %v1630_v16 }
0x1e6f   :  { %v2656_v8 = vpop.eup %2655 }
0x1e70   :  { %v1632_v25 = vmul.f32 0.5, %v2656_v8 }
0x1e72   :  { %v1633_v26 = vadd.f32 0.5, %v1632_v25 }
0x1e74   :  { %v1634_v2 = vsel %vm187_vm2, %v2656_v8, %v1633_v26 }
0x1e75   :  { %1636 = vrot.lane.b32.xlu0 %v1634_v2, %s2674_s5  ;;  %v1644_v28 = vmul.f32 %v1642_v27, %v1634_v2  ;;  %v3228_v27 = vld [vmem:[%s3286_s8] ss:$0 sm:$0xff] }
0x1e77   :  { %1646 = vrot.lane.b32.xlu1 %v1644_v28, %s2675_s12 }
0x1ee7   :  { %v1637_v23 = vpop.permute.xlu0 %1636 }
0x1ee8   :  { %v1639_v11 = vmul.f32 %v1637_v23, %v1634_v2 }
0x1ee9   :  { %v1647_v29 = vpop.permute.xlu1 %1646 }
0x1eea   :  { %v1649_v30 = vadd.f32 %v1647_v29, %v1639_v11 }
0x1eec   :  { %2657 = vtanh.f32 %v1649_v30 }
0x1ef9   :  { %v2658_v32 = vpop.eup %2657 }
0x1efa   :  { %1652 = vrot.lane.b32.xlu0 %v2658_v32, %s2673_s11 }
0x1efe   :  { %1746 = vrot.lane.b32.xlu0 %v1649_v30, %s2674_s5 }
0x1f6c   :  { %v1653_v33 = vpop.permute.xlu0 %1652 }
0x1f6d   :  { %v1655_v5 = vmul.f32 %v1653_v33, %v1634_v2 }
0x1f6f   :  { %1657 = vrot.lane.b32.xlu1 %v1655_v5, %s2674_s5 }
0x1f70   :  { %v1747_v51 = vpop.permute.xlu0 %1746 }
0x1fe1   :  { %v1658_v35 = vpop.permute.xlu1 %1657 }
0x1fe2   :  { %1660 = vst.msk [vmem:[#allocation3 + $0x28] sm:$0xff] %vm51_vm1, %v1658_v35  ;;  %2545 = vmatmul.mubr.msk.f32.vlgmr.msra.gmra.mxu0 %vm51_vm1, %v1658_v35 }
0x1fe3   :  { %2559 = vmatpush3.msra.mxu0 %v1894_v31  ;;  %2566 = vmatprep.mubr.msk.f32.mxu0 %vm51_vm1, %v1883_v36 }
0x1fe4   :  { %2560 = vmatprep.subr.mxu0 %v1893_v3 }
0x1fe5   :  { %2561 = vmatpush3.msra.mxu0 %v1893_v3 }
0x1fe6   :  { %2562 = vmatprep.subr.mxu0 %v1892_v37 }
0x1fe7   :  { %2563 = vmatpush3.msra.mxu0 %v1892_v37 }
0x1fe8   :  { %2564 = vmatprep.subr.mxu0 %v1891_v39 }
0x1fe9   :  { %2565 = vmatpush3.msra.mxu0 %v1891_v39  ;;  %v1888_v7 = vld [vmem:[#allocation3 + $0x28] sm:$0xff] }
0x1fea   :  { %2567 = vmatmul.mubr.msk.f32.vlgmr.msra.gmra.mxu0 %vm51_vm1, %v1884_v4 }
0x1feb   :  { %2569 = vmatprep.mubr.msk.f32.mxu0 %vm51_vm1, %v1885_v40 }
0x1fee   :  { %2570 = vmatmul.mubr.msk.f32.gmra.mxu0 %vm51_vm1, %v1886_v41 }
0x1fef   :  { %2572 = vmatprep.mubr.msk.f32.mxu0 %vm51_vm1, %v1887_v42 }
0x1ff2   :  { %2573 = vmatmul.mubr.msk.f32.gmra.mxu0 %vm51_vm1, %v1888_v7 }
0x20a2   :  { %v1729_v43 = vpop.f32.mrf.mxu0 }
0x20a3   :  { %v1733_v45 = vadd.f32 %v1729_v43, %v2838_v38 }
0x20a4   :  { %v2546_v55 = vpop.f32.mrf.mxu0 }
0x20a5   :  { %v1734_v46 = vmul.f32 0.5, %v1733_v45 }
0x20a7   :  { %v1735_v47 = vsel %vm187_vm2, %v1733_v45, %v1734_v46 }
0x20a8   :  { %2659 = vtanh.f32 %v1735_v47 }
0x20aa   :  { %v2568_v17 = vpop.f32.mrf.mxu0 }
0x20ac   :  { %v1985_v22 = vpop.f32.mrf.mxu0 }
0x20ae   :  { %v2571_v25 = vpop.f32.mrf.mxu0 }
0x20b0   :  { %v1995_v28 = vpop.f32.mrf.mxu0 }
0x20b2   :  { %v2574_v33 = vpop.f32.mrf.mxu0 }
0x20b4   :  { %v2005_v42 = vpop.f32.mrf.mxu0 }
0x20b5   :  { %v2660_v48 = vpop.eup %2659 }
0x20b6   :  { %v1737_v49 = vmul.f32 0.5, %v2660_v48 }
0x20b8   :  { %v1738_v50 = vadd.f32 0.5, %v1737_v49 }
0x20ba   :  { %v1739_v52 = vsel %vm187_vm2, %v2660_v48, %v1738_v50 }
0x20bb   :  { %1741 = vrot.lane.b32.xlu1 %v1739_v52, %s2674_s5  ;;  %v1749_v53 = vmul.f32 %v1747_v51, %v1739_v52 }
0x20bd   :  { %1751 = vrot.lane.b32.xlu0 %v1749_v53, %s2675_s12 }
0x212d   :  { %v1742_v54 = vpop.permute.xlu1 %1741 }
0x212e   :  { %v1744_v38 = vmul.f32 %v1742_v54, %v1739_v52 }
0x212f   :  { %v1752_v10 = vpop.permute.xlu0 %1751 }
0x2130   :  { %v1754_v56 = vadd.f32 %v1752_v10, %v1744_v38 }
0x2132   :  { %2661 = vtanh.f32 %v1754_v56 }
0x213f   :  { %v2662_v58 = vpop.eup %2661 }
0x2140   :  { %1757 = vrot.lane.b32.xlu1 %v2662_v58, %s2673_s11 }
0x2144   :  { %1851 = vrot.lane.b32.xlu1 %v1754_v56, %s2674_s5 }
0x21b2   :  { %v1758_v59 = vpop.permute.xlu1 %1757 }
0x21b3   :  { %v1760_v60 = vmul.f32 %v1758_v59, %v1739_v52 }
0x21b5   :  { %1762 = vrot.lane.b32.xlu0 %v1760_v60, %s2674_s5 }
0x21b6   :  { %v1852_v10 = vpop.permute.xlu1 %1851 }
0x2227   :  { %v1763_v61 = vpop.permute.xlu0 %1762 }
0x2228   :  { %1765 = vst.msk [vmem:[#allocation3 + $0x30] sm:$0xff] %vm51_vm1, %v1763_v61  ;;  %2556 = vmatmul.mubr.msk.f32.vlgmr.msra.gmra.mxu1 %vm51_vm1, %v1763_v61 }
0x2229   :  { %2579 = vmatpush3.msra.mxu1 %v1882_v57  ;;  %2586 = vmatprep.mubr.msk.f32.mxu1 %vm51_vm1, %v1871_v63 }
0x222a   :  { %2580 = vmatprep.subr.mxu1 %v1881_v62 }
0x222b   :  { %2581 = vmatpush3.msra.mxu1 %v1881_v62 }
0x222c   :  { %2582 = vmatprep.subr.mxu1 %v1880_v44 }
0x222d   :  { %2583 = vmatpush3.msra.mxu1 %v1880_v44 }
0x222e   :  { %2584 = vmatprep.subr.mxu1 %v1879_v0 }
0x222f   :  { %2585 = vmatpush3.msra.mxu1 %v1879_v0  ;;  %v1889_v34 = vld [vmem:[#allocation3 + $0x30] sm:$0xff] }
0x2230   :  { %2587 = vmatmul.mubr.msk.f32.vlgmr.msra.gmra.mxu1 %vm51_vm1, %v1872_v9  ;;  %2575 = vmatprep.mubr.msk.f32.mxu0 %vm51_vm1, %v1889_v34 }
0x2231   :  { %2589 = vmatprep.mubr.msk.f32.mxu1 %vm51_vm1, %v1873_v1 }
0x2234   :  { %2590 = vmatmul.mubr.msk.f32.gmra.mxu1 %vm51_vm1, %v1874_v6 }
0x2235   :  { %2592 = vmatprep.mubr.msk.f32.mxu1 %vm51_vm1, %v1875_v12 }
0x2238   :  { %2593 = vmatmul.mubr.msk.f32.gmra.mxu1 %vm51_vm1, %v1876_v13 }
0x2239   :  { %2595 = vmatprep.mubr.msk.f32.mxu1 %vm51_vm1, %v1877_v14 }
0x223c   :  { %2596 = vmatmul.mubr.msk.f32.gmra.mxu1 %vm51_vm1, %v1878_v15 }
0x22e8   :  { %v1834_v19 = vpop.f32.mrf.mxu1 }
0x22e9   :  { %v1838_v21 = vadd.f32 %v1834_v19, %v2812_v20 }
0x22ea   :  { %v2557_v24 = vpop.f32.mrf.mxu1 }
0x22eb   :  { %v1839_v16 = vmul.f32 0.5, %v1838_v21 }
0x22ed   :  { %v1840_v8 = vsel %vm187_vm2, %v1838_v21, %v1839_v16 }
0x22ee   :  { %2663 = vtanh.f32 %v1840_v8 }
0x22f0   :  { %v2588_v26 = vpop.f32.mrf.mxu1 }
0x22f1   :  { %v2120_v2 = vadd.f32 %v2588_v26, %v2568_v17 }
0x22f2   :  { %v2114_v23 = vpop.f32.mrf.mxu1 }
0x22f3   :  { %v2161_v11 = vadd.f32 %v3228_v27, %v2120_v2  ;;  %v2115_v20 = vadd.f32 %v2114_v23, %v1985_v22 }
0x22f4   :  { %v2591_v29 = vpop.f32.mrf.mxu1 }
0x22f5   :  { %vm2169_vm3 = vcmp.ge.f32.partialorder %v2161_v11, 0.0  ;;  %v2177_v30 = vmul.f32 0.01, %v2161_v11  ;;  %v2160_v31 = vadd.f32 %v3228_v27, %v2115_v20  ;;  %v2130_v32 = vadd.f32 %v2591_v29, %v2571_v25 }
0x22f6   :  { %v2124_v5 = vpop.f32.mrf.mxu1 }
0x22f7   :  { %v2185_v35 = vsel %vm2169_vm3, %v2161_v11, %v2177_v30  ;;  %vm2168_vm4 = vcmp.ge.f32.partialorder %v2160_v31, 0.0  ;;  %v2176_v3 = vmul.f32 0.01, %v2160_v31  ;;  %v2163_v36 = vadd.f32 %v3228_v27, %v2130_v32 }
0x22f8   :  { %2193 = vst.msk [vmem:[%s3287_s9 + $0x8] sm:$0xff] %vm51_vm1, %v2185_v35  ;;  %v2125_v37 = vadd.f32 %v2124_v5, %v1995_v28  ;;  %v2594_v39 = vpop.f32.mrf.mxu1 }
0x22f9   :  { %v2184_v4 = vsel %vm2168_vm4, %v2160_v31, %v2176_v3  ;;  %vm2171_vm5 = vcmp.ge.f32.partialorder %v2163_v36, 0.0  ;;  %v2179_v40 = vmul.f32 0.01, %v2163_v36  ;;  %v2140_v41 = vadd.f32 %v2594_v39, %v2574_v33 }
0x22fa   :  { %2192 = vst.msk [vmem:[%s3287_s9] sm:$0xff] %vm51_vm1, %v2184_v4  ;;  %v2162_v7 = vadd.f32 %v3228_v27, %v2125_v37  ;;  %v2134_v43 = vpop.f32.mrf.mxu1 }
0x22fb   :  { %v2664_v45 = vpop.eup %2663  ;;  %v2187_v55 = vsel %vm2171_vm5, %v2163_v36, %v2179_v40  ;;  %v2165_v46 = vadd.f32 %v3228_v27, %v2140_v41  ;;  %v2135_v47 = vadd.f32 %v2134_v43, %v2005_v42 }
0x22fc   :  { %2195 = vst.msk [vmem:[%s3287_s9 + $0x18] sm:$0xff] %vm51_vm1, %v2187_v55  ;;  %vm2170_vm6 = vcmp.ge.f32.partialorder %v2162_v7, 0.0  ;;  %v2178_v48 = vmul.f32 0.01, %v2162_v7  ;;  %v1842_v49 = vmul.f32 0.5, %v2664_v45  ;;  %v2597_v34 = vpop.f32.mrf.mxu1 }
0x22fd   :  { %vm2173_vm7 = vcmp.ge.f32.partialorder %v2165_v46, 0.0  ;;  %v2181_v50 = vmul.f32 0.01, %v2165_v46  ;;  %v2164_v51 = vadd.f32 %v3228_v27, %v2135_v47 }
0x22fe   :  { %v2186_v52 = vsel %vm2170_vm6, %v2162_v7, %v2178_v48  ;;  %v1843_v53 = vadd.f32 0.5, %v1842_v49  ;;  %v2144_v12 = vpop.f32.mrf.mxu1 }
0x22ff   :  { %2194 = vst.msk [vmem:[%s3287_s9 + $0x10] sm:$0xff] %vm51_vm1, %v2186_v52  ;;  %v2189_v54 = vsel %vm2173_vm7, %v2165_v46, %v2181_v50  ;;  %vm2172_vm8 = vcmp.ge.f32.partialorder %v2164_v51, 0.0  ;;  %v2180_v38 = vmul.f32 0.01, %v2164_v51 }
0x2300   :  { %2197 = vst.msk [vmem:[%s3287_s9 + $0x28] sm:$0xff] %vm51_vm1, %v2189_v54  ;;  %v1844_v56 = vsel %vm187_vm2, %v2664_v45, %v1843_v53 }
0x2301   :  { %v2188_v57 = vsel %vm2172_vm8, %v2164_v51, %v2180_v38  ;;  %1846 = vrot.lane.b32.xlu0 %v1844_v56, %s2674_s5  ;;  %v1854_v58 = vmul.f32 %v1852_v10, %v1844_v56 }
0x2302   :  { %2196 = vst.msk [vmem:[%s3287_s9 + $0x20] sm:$0xff] %vm51_vm1, %v2188_v57 }
0x2303   :  { %1856 = vrot.lane.b32.xlu1 %v1854_v58, %s2675_s12 }
0x2373   :  { %v1847_v59 = vpop.permute.xlu0 %1846 }
0x2374   :  { %v1849_v60 = vmul.f32 %v1847_v59, %v1844_v56 }
0x2375   :  { %v1857_v61 = vpop.permute.xlu1 %1856 }
0x2376   :  { %v1859_v62 = vadd.f32 %v1857_v61, %v1849_v60 }
0x2378   :  { %2665 = vtanh.f32 %v1859_v62 }
0x2385   :  { %v2666_v63 = vpop.eup %2665 }
0x2386   :  { %1862 = vrot.lane.b32.xlu0 %v2666_v63, %s2673_s11 }
0x23f8   :  { %v1863_v18 = vpop.permute.xlu0 %1862 }
0x23f9   :  { %v1865_v44 = vmul.f32 %v1863_v18, %v1844_v56 }
0x23fb   :  { %1867 = vrot.lane.b32.xlu1 %v1865_v44, %s2674_s5 }
0x246d   :  { %v1868_v0 = vpop.permute.xlu1 %1867 }
0x246e   :  { %1870 = vst.msk [vmem:[#allocation3 + $0x38] sm:$0xff] %vm51_vm1, %v1868_v0 }
0x2475   :  { %v1890_v9 = vld [vmem:[#allocation3 + $0x38] sm:$0xff] }
0x2476   :  { %2576 = vmatmul.mubr.msk.f32.gmra.mxu0 %vm51_vm1, %v1890_v9 }
0x2536   :  { %v2577_v1 = vpop.f32.mrf.mxu0 }
0x2537   :  { %v2150_v6 = vadd.f32 %v2597_v34, %v2577_v1 }
0x2538   :  { %v2015_v13 = vpop.f32.mrf.mxu0 }
0x2539   :  { %v2167_v14 = vadd.f32 %v3228_v27, %v2150_v6  ;;  %v2145_v15 = vadd.f32 %v2144_v12, %v2015_v13 }
0x253b   :  { %vm2175_vm9 = vcmp.ge.f32.partialorder %v2167_v14, 0.0  ;;  %v2183_v17 = vmul.f32 0.01, %v2167_v14  ;;  %v2166_v19 = vadd.f32 %v3228_v27, %v2145_v15 }
0x253d   :  { %v2191_v21 = vsel %vm2175_vm9, %v2167_v14, %v2183_v17  ;;  %vm2174_vm10 = vcmp.ge.f32.partialorder %v2166_v19, 0.0  ;;  %v2182_v22 = vmul.f32 0.01, %v2166_v19 }
0x253e   :  { %2199 = vst.msk [vmem:[%s3287_s9 + $0x38] sm:$0xff] %vm51_vm1, %v2191_v21 }
0x253f   :  { %v2190_v24 = vsel %vm2174_vm10, %v2166_v19, %v2182_v22 }
0x2540   :  { %2198 = vst.msk [vmem:[%s3287_s9 + $0x30] sm:$0xff] %vm51_vm1, %v2190_v24 }

</bundles_post_ra>
